<compile_context>
chip_gen: v7x
topology: tpu7x:2x2x1
jax: 0.10.0
libtpu: 0.0.40
codegen_flags: <defaults>
</compile_context>

<pallas_src>
import numpy as np
import jax
import jax.numpy as jnp
from jax.experimental import pallas as pl
from jax.experimental.pallas import tpu as pltpu

# 'highest' keeps the pure-JAX reference at true-f32 matmul accuracy; the kernel
# uses explicit bf16 operands + f32 accumulation and is unaffected.
jax.config.update("jax_default_matmul_precision", "highest")

# Small synthetic CLIP text transformer configuration.
B, S, D, H, L, E = 2, 8, 32, 4, 2, 32      # batch, seq, width, heads, layers, proj dim
DH = D // H
N = B * S
EPS = 1e-5
NEG = -1e30                                 # finite stand-in for -inf in the causal mask


def _layernorm(v, g, b):
    mu = jnp.mean(v, axis=-1, keepdims=True)
    var = jnp.mean(jnp.square(v - mu), axis=-1, keepdims=True)
    return (v - mu) * jax.lax.rsqrt(var + EPS) * g + b


# ----------------------------------------------------------------------------
# Single fused kernel: add_pos -> L resblocks -> ln_final/EOT gather/projection
# ----------------------------------------------------------------------------
def encoder_kernel(prompts_ref, pos_ref, eot_ref,
                   wqkv_ref, wo_ref, wfc_ref, wpj_ref,
                   bqkv_ref, bfc_ref, dvec_ref, fvec_ref, proj_ref,
                   o_ref):
    f32 = jnp.float32
    bf16 = jnp.bfloat16
    dflt = jax.lax.Precision.DEFAULT

    # x = prompts + positional embedding; batch folded onto sublanes: (B*S, D)
    x = prompts_ref[...] + jnp.concatenate([pos_ref[...]] * B, axis=0)

    # Causal mask built in-register from iota (no HBM input, never leaves vregs).
    ri = jax.lax.broadcasted_iota(jnp.int32, (S, S), 0)
    ci = jax.lax.broadcasted_iota(jnp.int32, (S, S), 1)
    mask = jnp.where(ci > ri, f32(NEG), f32(0.0))          # (S, S)

    scale = f32(1.0 / (DH ** 0.5))

    for l in range(L):                                     # static layer loop, L=2
        dv = dvec_ref[l]                                   # (6, D)
        ln1g, ln1b = dv[0:1], dv[1:2]
        ln2g, ln2b = dv[2:3], dv[3:4]
        bo, bpj = dv[4:5], dv[5:6]

        # ---- multi-head causal self-attention ----
        xn = _layernorm(x, ln1g, ln1b)                     # (N, D) f32
        qkv = jnp.dot(xn.astype(bf16), wqkv_ref[l],
                      preferred_element_type=f32, precision=dflt) + bqkv_ref[l]   # (N, 3D)
        qkv_b = qkv.astype(bf16)

        # Pack (head, batch) onto a leading batch axis: (H*B, S, DH).
        def hb_pack(base, src=qkv_b):
            return jnp.stack(
                [src[b * S:(b + 1) * S, base + h * DH: base + (h + 1) * DH]
                 for h in range(H) for b in range(B)])
        qs, ks, vs = hb_pack(0), hb_pack(D), hb_pack(2 * D)

        s = jnp.einsum('nqd,nkd->nqk', qs, ks,
                       preferred_element_type=f32, precision=dflt)                # (H*B, S, S)
        s = s * scale + mask                                                      # broadcast mask
        s = s - jnp.max(s, axis=-1, keepdims=True)
        p = jnp.exp(s)
        p = p / jnp.sum(p, axis=-1, keepdims=True)
        o = jnp.einsum('nqk,nkd->nqd', p.astype(bf16), vs,
                       preferred_element_type=f32, precision=dflt)                # (H*B, S, DH)

        # (H*B, S, DH) -> (N, D): heads back onto lanes, batch back onto sublanes.
        attn = jnp.concatenate(
            [jnp.concatenate([o[h * B + b] for h in range(H)], axis=-1)
             for b in range(B)], axis=0)
        attn = jnp.dot(attn.astype(bf16), wo_ref[l],
                       preferred_element_type=f32, precision=dflt)                # (N, D)
        x = x + attn + bo

        # ---- MLP with QuickGELU ----
        xn = _layernorm(x, ln2g, ln2b)
        h1 = jnp.dot(xn.astype(bf16), wfc_ref[l],
                     preferred_element_type=f32, precision=dflt) + bfc_ref[l]     # (N, 4D)
        h1 = h1 * jax.nn.sigmoid(1.702 * h1)                                      # QuickGELU, f32
        x = x + jnp.dot(h1.astype(bf16), wpj_ref[l],
                        preferred_element_type=f32, precision=dflt) + bpj

    # ---- epilogue: gather EOT rows (pre-LN), ln_final on B rows only, project ----
    rows = jax.lax.broadcasted_iota(jnp.int32, (B, N), 0)
    cols = jax.lax.broadcasted_iota(jnp.int32, (B, N), 1)
    onehot = (cols == (eot_ref[...] + rows * S)).astype(f32)                      # (B, N)
    sel = jnp.dot(onehot, x, preferred_element_type=f32)                          # (B, D), exact gather
    fv = fvec_ref[...]                                                            # (2, D)
    seln = _layernorm(sel, fv[0:1], fv[1:2])
    o_ref[...] = jnp.dot(seln.astype(bf16), proj_ref[...],
                         preferred_element_type=f32, precision=dflt)              # (B, E)


def _full_spec(a):
    nd = a.ndim
    return pl.BlockSpec(a.shape, lambda i, nd=nd: (0,) * nd)


# ----------------------------------------------------------------------------
# Wrapper: pack per-layer params once (stacked along L, weights in bf16),
# then the whole forward is a single pallas_call.
# ----------------------------------------------------------------------------
def pack_params(params):
    layers = params["layers"]
    bf = lambda a: a.astype(jnp.bfloat16)
    return dict(
        pos=params["pos"],
        wqkv=bf(jnp.stack([lp["wqkv"] for lp in layers])),          # (L, D, 3D) bf16
        wo=bf(jnp.stack([lp["wo"] for lp in layers])),              # (L, D, D)  bf16
        wfc=bf(jnp.stack([lp["wfc"] for lp in layers])),            # (L, D, 4D) bf16
        wpj=bf(jnp.stack([lp["wpj"] for lp in layers])),            # (L, 4D, D) bf16
        bqkv=jnp.stack([lp["bqkv"] for lp in layers]),              # (L, 1, 3D) f32
        bfc=jnp.stack([lp["bfc"] for lp in layers]),                # (L, 1, 4D) f32
        dvec=jnp.stack([jnp.concatenate(
            [lp["ln1g"], lp["ln1b"], lp["ln2g"], lp["ln2b"], lp["bo"], lp["bpj"]],
            axis=0) for lp in layers]),                             # (L, 6, D)  f32
        fvec=jnp.concatenate([params["lnfg"], params["lnfb"]], axis=0),   # (2, D) f32
        proj=bf(params["proj"]),                                    # (D, E) bf16
    )


def text_encoder_forward(prompts, tokenized_prompts, packed):
    prompts2d = prompts.reshape(N, D)                               # free layout plumbing
    # EOT position glue (same role as torch .argmax indexing).
    eot = jnp.argmax(tokenized_prompts, axis=-1).astype(jnp.int32).reshape(B, 1)
    args = [prompts2d, packed["pos"], eot,
            packed["wqkv"], packed["wo"], packed["wfc"], packed["wpj"],
            packed["bqkv"], packed["bfc"], packed["dvec"],
            packed["fvec"], packed["proj"]]
    return pl.pallas_call(
        encoder_kernel,
        out_shape=jax.ShapeDtypeStruct((B, E), jnp.float32),
        grid=(1,),
        in_specs=[_full_spec(a) for a in args],
        out_specs=pl.BlockSpec((B, E), lambda i: (0, 0)),
        compiler_params=pltpu.CompilerParams(dimension_semantics=("arbitrary",)),
    )(*args)


# ----------------------------------------------------------------------------
# Deterministic synthetic parameters + pure-JAX f32 reference
# ----------------------------------------------------------------------------
def make_params(key):
    keys = iter(jax.random.split(key, 64))

    def nrm(shape, scale=0.02):
        return (scale * jax.random.normal(next(keys), shape)).astype(jnp.float32)

    layers = []
    for _ in range(L):
        layers.append(dict(
            ln1g=jnp.ones((1, D), jnp.float32), ln1b=jnp.zeros((1, D), jnp.float32),
            wqkv=nrm((D, 3 * D)), bqkv=nrm((1, 3 * D), 0.01),
            wo=nrm((D, D)), bo=nrm((1, D), 0.01),
            ln2g=jnp.ones((1, D), jnp.float32), ln2b=jnp.zeros((1, D), jnp.float32),
            wfc=nrm((D, 4 * D)), bfc=nrm((1, 4 * D), 0.01),
            wpj=nrm((4 * D, D)), bpj=nrm((1, D), 0.01),
        ))
    return dict(pos=nrm((S, D), 0.01), layers=layers,
                lnfg=jnp.ones((1, D), jnp.float32),
                lnfb=jnp.zeros((1, D), jnp.float32),
                proj=nrm((D, E)))


def reference_forward(prompts, tokens, params):
    def ln(v, g, b):
        mu = v.mean(-1, keepdims=True)
        var = ((v - mu) ** 2).mean(-1, keepdims=True)
        return (v - mu) * jax.lax.rsqrt(var + EPS) * g + b

    mask = jnp.triu(jnp.full((S, S), NEG, jnp.float32), k=1)
    x = prompts + params["pos"]
    for lp in params["layers"]:
        xn = ln(x, lp["ln1g"], lp["ln1b"])
        qkv = xn @ lp["wqkv"] + lp["bqkv"]
        q, k, v = jnp.split(qkv, 3, axis=-1)
        q = q.reshape(B, S, H, DH).transpose(0, 2, 1, 3) / (DH ** 0.5)
        k = k.reshape(B, S, H, DH).transpose(0, 2, 1, 3)
        v = v.reshape(B, S, H, DH).transpose(0, 2, 1, 3)
        s = jnp.einsum("bhqd,bhkd->bhqk", q, k) + mask
        p = jax.nn.softmax(s, axis=-1)
        attn = jnp.einsum("bhqk,bhkd->bhqd", p, v).transpose(0, 2, 1, 3).reshape(B, S, D)
        x = x + attn @ lp["wo"] + lp["bo"]
        xn = ln(x, lp["ln2g"], lp["ln2b"])
        h = xn @ lp["wfc"] + lp["bfc"]
        h = h * jax.nn.sigmoid(1.702 * h)
        x = x + h @ lp["wpj"] + lp["bpj"]
    x = ln(x, params["lnfg"], params["lnfb"])
    eot = jnp.argmax(tokens, axis=-1)
    return x[jnp.arange(B), eot] @ params["proj"]


if __name__ == "__main__":
    key = jax.random.PRNGKey(0)
    k_prompts, k_tokens, k_params = jax.random.split(key, 3)
    prompts = jax.random.normal(k_prompts, (B, S, D), jnp.float32)
    tokenized_prompts = jax.random.randint(k_tokens, (B, S), 0, 49408, dtype=jnp.int32)
    params = make_params(k_params)
    packed = pack_params(params)

    out = text_encoder_forward(prompts, tokenized_prompts, packed)
    out = jax.block_until_ready(out)
    assert out.shape == (B, E)

    ref = reference_forward(prompts, tokenized_prompts, params)
    np.testing.assert_allclose(np.asarray(out), np.asarray(ref), rtol=2e-2, atol=2e-3)

    print("KERNEL_OK")
</pallas_src>

<mosaic_0001>
module attributes {stable_mosaic.version = 11 : i64} {
  func.func @encoder_kernel(%arg0: i32, %arg1: memref<16x32xf32, #tpu.memory_space<vmem>>, %arg2: memref<8x32xf32, #tpu.memory_space<vmem>>, %arg3: memref<2x1xi32, #tpu.memory_space<vmem>>, %arg4: memref<2x32x96xbf16, #tpu.memory_space<vmem>>, %arg5: memref<2x32x32xbf16, #tpu.memory_space<vmem>>, %arg6: memref<2x32x128xbf16, #tpu.memory_space<vmem>>, %arg7: memref<2x128x32xbf16, #tpu.memory_space<vmem>>, %arg8: memref<2x1x96xf32, #tpu.memory_space<vmem>>, %arg9: memref<2x1x128xf32, #tpu.memory_space<vmem>>, %arg10: memref<2x6x32xf32, #tpu.memory_space<vmem>>, %arg11: memref<2x32xf32, #tpu.memory_space<vmem>>, %arg12: memref<32x32xbf16, #tpu.memory_space<vmem>>, %arg13: memref<2x32xf32, #tpu.memory_space<vmem>>) attributes {dimension_semantics = [#tpu.dimension_semantics<arbitrary>], iteration_bounds = array<i64: 1>, scalar_prefetch = 0 : i64, scratch_operands = 0 : i64, tpu.core_type = #tpu.core_type<tc>, window_params = [{pipeline_mode = #tpu.pipeline_mode<synchronous>, transform_indices = @transform_0, window_bounds = array<i64: 16, 32>}, {pipeline_mode = #tpu.pipeline_mode<synchronous>, transform_indices = @transform_1, window_bounds = array<i64: 8, 32>}, {pipeline_mode = #tpu.pipeline_mode<synchronous>, transform_indices = @transform_2, window_bounds = array<i64: 2, 1>}, {pipeline_mode = #tpu.pipeline_mode<synchronous>, transform_indices = @transform_3, window_bounds = array<i64: 2, 32, 96>}, {pipeline_mode = #tpu.pipeline_mode<synchronous>, transform_indices = @transform_4, window_bounds = array<i64: 2, 32, 32>}, {pipeline_mode = #tpu.pipeline_mode<synchronous>, transform_indices = @transform_5, window_bounds = array<i64: 2, 32, 128>}, {pipeline_mode = #tpu.pipeline_mode<synchronous>, transform_indices = @transform_6, window_bounds = array<i64: 2, 128, 32>}, {pipeline_mode = #tpu.pipeline_mode<synchronous>, transform_indices = @transform_7, window_bounds = array<i64: 2, 1, 96>}, {pipeline_mode = #tpu.pipeline_mode<synchronous>, transform_indices = @transform_8, window_bounds = array<i64: 2, 1, 128>}, {pipeline_mode = #tpu.pipeline_mode<synchronous>, transform_indices = @transform_9, window_bounds = array<i64: 2, 6, 32>}, {pipeline_mode = #tpu.pipeline_mode<synchronous>, transform_indices = @transform_10, window_bounds = array<i64: 2, 32>}, {pipeline_mode = #tpu.pipeline_mode<synchronous>, transform_indices = @transform_11, window_bounds = array<i64: 32, 32>}, {pipeline_mode = #tpu.pipeline_mode<synchronous>, transform_indices = @transform_12, window_bounds = array<i64: 2, 32>}]} {
    %c0 = arith.constant 0 : index
    %c0_0 = arith.constant 0 : index
    %0 = vector.load %arg1[%c0, %c0_0] : memref<16x32xf32, #tpu.memory_space<vmem>>, vector<16x32xf32>
    %c0_1 = arith.constant 0 : index
    %c0_2 = arith.constant 0 : index
    %1 = vector.load %arg2[%c0_1, %c0_2] : memref<8x32xf32, #tpu.memory_space<vmem>>, vector<8x32xf32>
    %2 = tpu.concatenate %1, %1 in 0 : vector<8x32xf32>, vector<8x32xf32> -> vector<16x32xf32>
    %3 = arith.addf %0, %2 : vector<16x32xf32>
    %4 = tpu.iota {dimensions = array<i32: 0>} : vector<8x8xi32>
    %5 = tpu.iota {dimensions = array<i32: 1>} : vector<8x8xi32>
    %6 = arith.cmpi sgt, %5, %4 : vector<8x8xi32>
    %cst = arith.constant -1.000000e+30 : f32
    %cst_3 = arith.constant 0.000000e+00 : f32
    %7 = vector.broadcast %cst : f32 to vector<8x8xf32>
    %8 = vector.broadcast %cst_3 : f32 to vector<8x8xf32>
    %9 = arith.select %6, %7, %8 : vector<8x8xi1>, vector<8x8xf32>
    %c0_4 = arith.constant 0 : index
    %c0_5 = arith.constant 0 : index
    %c0_6 = arith.constant 0 : index
    %10 = vector.load %arg10[%c0_4, %c0_5, %c0_6] : memref<2x6x32xf32, #tpu.memory_space<vmem>>, vector<1x6x32xf32>
    %11 = vector.shape_cast %10 : vector<1x6x32xf32> to vector<6x32xf32>
    %12 = vector.extract_strided_slice %11 {offsets = [0, 0], sizes = [1, 32], strides = [1, 1]} : vector<6x32xf32> to vector<1x32xf32>
    %13 = vector.extract_strided_slice %11 {offsets = [1, 0], sizes = [1, 32], strides = [1, 1]} : vector<6x32xf32> to vector<1x32xf32>
    %14 = vector.extract_strided_slice %11 {offsets = [2, 0], sizes = [1, 32], strides = [1, 1]} : vector<6x32xf32> to vector<1x32xf32>
    %15 = vector.extract_strided_slice %11 {offsets = [3, 0], sizes = [1, 32], strides = [1, 1]} : vector<6x32xf32> to vector<1x32xf32>
    %16 = vector.extract_strided_slice %11 {offsets = [4, 0], sizes = [1, 32], strides = [1, 1]} : vector<6x32xf32> to vector<1x32xf32>
    %17 = vector.extract_strided_slice %11 {offsets = [5, 0], sizes = [1, 32], strides = [1, 1]} : vector<6x32xf32> to vector<1x32xf32>
    %cst_7 = arith.constant dense<0.000000e+00> : vector<16xf32>
    %18 = vector.multi_reduction <add>, %3, %cst_7 [1] : vector<16x32xf32> to vector<16xf32>
    %19 = vector.shape_cast %18 : vector<16xf32> to vector<16x1xf32>
    %cst_8 = arith.constant 3.200000e+01 : f32
    %20 = vector.broadcast %cst_8 : f32 to vector<16x1xf32>
    %21 = arith.divf %19, %20 : vector<16x1xf32>
    %22 = vector.broadcast %21 : vector<16x1xf32> to vector<16x32xf32>
    %23 = arith.subf %3, %22 : vector<16x32xf32>
    %24 = arith.mulf %23, %23 : vector<16x32xf32>
    %cst_9 = arith.constant dense<0.000000e+00> : vector<16xf32>
    %25 = vector.multi_reduction <add>, %24, %cst_9 [1] : vector<16x32xf32> to vector<16xf32>
    %26 = vector.shape_cast %25 : vector<16xf32> to vector<16x1xf32>
    %cst_10 = arith.constant 3.200000e+01 : f32
    %27 = vector.broadcast %cst_10 : f32 to vector<16x1xf32>
    %28 = arith.divf %26, %27 : vector<16x1xf32>
    %29 = vector.broadcast %21 : vector<16x1xf32> to vector<16x32xf32>
    %30 = arith.subf %3, %29 : vector<16x32xf32>
    %cst_11 = arith.constant 9.99999974E-6 : f32
    %31 = vector.broadcast %cst_11 : f32 to vector<16x1xf32>
    %32 = arith.addf %28, %31 : vector<16x1xf32>
    %33 = math.rsqrt %32 : vector<16x1xf32>
    %34 = vector.broadcast %33 : vector<16x1xf32> to vector<16x32xf32>
    %35 = arith.mulf %30, %34 : vector<16x32xf32>
    %36 = vector.broadcast %12 : vector<1x32xf32> to vector<16x32xf32>
    %37 = arith.mulf %35, %36 : vector<16x32xf32>
    %38 = vector.broadcast %13 : vector<1x32xf32> to vector<16x32xf32>
    %39 = arith.addf %37, %38 : vector<16x32xf32>
    %40 = arith.truncf %39 : vector<16x32xf32> to vector<16x32xbf16>
    %c0_12 = arith.constant 0 : index
    %c0_13 = arith.constant 0 : index
    %c0_14 = arith.constant 0 : index
    %41 = vector.load %arg4[%c0_12, %c0_13, %c0_14] : memref<2x32x96xbf16, #tpu.memory_space<vmem>>, vector<1x32x96xbf16>
    %42 = vector.shape_cast %41 : vector<1x32x96xbf16> to vector<32x96xbf16>
    %cst_15 = arith.constant dense<0.000000e+00> : vector<16x96xf32>
    %43 = tpu.matmul %40, %42, %cst_15 {dimension_numbers = #tpu.dot_dimension_numbers<[1], [0], [0], [1], [0, 0, 1, 1], [], []>} : vector<16x32xbf16>, vector<32x96xbf16>, vector<16x96xf32> -> vector<16x96xf32>
    %c0_16 = arith.constant 0 : index
    %c0_17 = arith.constant 0 : index
    %c0_18 = arith.constant 0 : index
    %44 = vector.load %arg8[%c0_16, %c0_17, %c0_18] : memref<2x1x96xf32, #tpu.memory_space<vmem>>, vector<1x1x96xf32>
    %45 = vector.shape_cast %44 : vector<1x1x96xf32> to vector<1x96xf32>
    %46 = vector.broadcast %45 : vector<1x96xf32> to vector<16x96xf32>
    %47 = arith.addf %43, %46 : vector<16x96xf32>
    %48 = arith.truncf %47 : vector<16x96xf32> to vector<16x96xbf16>
    %49 = vector.extract_strided_slice %48 {offsets = [0, 0], sizes = [8, 8], strides = [1, 1]} : vector<16x96xbf16> to vector<8x8xbf16>
    %50 = vector.extract_strided_slice %48 {offsets = [8, 0], sizes = [8, 8], strides = [1, 1]} : vector<16x96xbf16> to vector<8x8xbf16>
    %51 = vector.extract_strided_slice %48 {offsets = [0, 8], sizes = [8, 8], strides = [1, 1]} : vector<16x96xbf16> to vector<8x8xbf16>
    %52 = vector.extract_strided_slice %48 {offsets = [8, 8], sizes = [8, 8], strides = [1, 1]} : vector<16x96xbf16> to vector<8x8xbf16>
    %53 = vector.extract_strided_slice %48 {offsets = [0, 16], sizes = [8, 8], strides = [1, 1]} : vector<16x96xbf16> to vector<8x8xbf16>
    %54 = vector.extract_strided_slice %48 {offsets = [8, 16], sizes = [8, 8], strides = [1, 1]} : vector<16x96xbf16> to vector<8x8xbf16>
    %55 = vector.extract_strided_slice %48 {offsets = [0, 24], sizes = [8, 8], strides = [1, 1]} : vector<16x96xbf16> to vector<8x8xbf16>
    %56 = vector.extract_strided_slice %48 {offsets = [8, 24], sizes = [8, 8], strides = [1, 1]} : vector<16x96xbf16> to vector<8x8xbf16>
    %57 = vector.shape_cast %49 : vector<8x8xbf16> to vector<1x8x8xbf16>
    %58 = vector.shape_cast %50 : vector<8x8xbf16> to vector<1x8x8xbf16>
    %59 = vector.shape_cast %51 : vector<8x8xbf16> to vector<1x8x8xbf16>
    %60 = vector.shape_cast %52 : vector<8x8xbf16> to vector<1x8x8xbf16>
    %61 = vector.shape_cast %53 : vector<8x8xbf16> to vector<1x8x8xbf16>
    %62 = vector.shape_cast %54 : vector<8x8xbf16> to vector<1x8x8xbf16>
    %63 = vector.shape_cast %55 : vector<8x8xbf16> to vector<1x8x8xbf16>
    %64 = vector.shape_cast %56 : vector<8x8xbf16> to vector<1x8x8xbf16>
    %65 = tpu.concatenate %57, %58, %59, %60, %61, %62, %63, %64 in 0 : vector<1x8x8xbf16>, vector<1x8x8xbf16>, vector<1x8x8xbf16>, vector<1x8x8xbf16>, vector<1x8x8xbf16>, vector<1x8x8xbf16>, vector<1x8x8xbf16>, vector<1x8x8xbf16> -> vector<8x8x8xbf16>
    %66 = vector.extract_strided_slice %48 {offsets = [0, 32], sizes = [8, 8], strides = [1, 1]} : vector<16x96xbf16> to vector<8x8xbf16>
    %67 = vector.extract_strided_slice %48 {offsets = [8, 32], sizes = [8, 8], strides = [1, 1]} : vector<16x96xbf16> to vector<8x8xbf16>
    %68 = vector.extract_strided_slice %48 {offsets = [0, 40], sizes = [8, 8], strides = [1, 1]} : vector<16x96xbf16> to vector<8x8xbf16>
    %69 = vector.extract_strided_slice %48 {offsets = [8, 40], sizes = [8, 8], strides = [1, 1]} : vector<16x96xbf16> to vector<8x8xbf16>
    %70 = vector.extract_strided_slice %48 {offsets = [0, 48], sizes = [8, 8], strides = [1, 1]} : vector<16x96xbf16> to vector<8x8xbf16>
    %71 = vector.extract_strided_slice %48 {offsets = [8, 48], sizes = [8, 8], strides = [1, 1]} : vector<16x96xbf16> to vector<8x8xbf16>
    %72 = vector.extract_strided_slice %48 {offsets = [0, 56], sizes = [8, 8], strides = [1, 1]} : vector<16x96xbf16> to vector<8x8xbf16>
    %73 = vector.extract_strided_slice %48 {offsets = [8, 56], sizes = [8, 8], strides = [1, 1]} : vector<16x96xbf16> to vector<8x8xbf16>
    %74 = vector.shape_cast %66 : vector<8x8xbf16> to vector<1x8x8xbf16>
    %75 = vector.shape_cast %67 : vector<8x8xbf16> to vector<1x8x8xbf16>
    %76 = vector.shape_cast %68 : vector<8x8xbf16> to vector<1x8x8xbf16>
    %77 = vector.shape_cast %69 : vector<8x8xbf16> to vector<1x8x8xbf16>
    %78 = vector.shape_cast %70 : vector<8x8xbf16> to vector<1x8x8xbf16>
    %79 = vector.shape_cast %71 : vector<8x8xbf16> to vector<1x8x8xbf16>
    %80 = vector.shape_cast %72 : vector<8x8xbf16> to vector<1x8x8xbf16>
    %81 = vector.shape_cast %73 : vector<8x8xbf16> to vector<1x8x8xbf16>
    %82 = tpu.concatenate %74, %75, %76, %77, %78, %79, %80, %81 in 0 : vector<1x8x8xbf16>, vector<1x8x8xbf16>, vector<1x8x8xbf16>, vector<1x8x8xbf16>, vector<1x8x8xbf16>, vector<1x8x8xbf16>, vector<1x8x8xbf16>, vector<1x8x8xbf16> -> vector<8x8x8xbf16>
    %83 = vector.extract_strided_slice %48 {offsets = [0, 64], sizes = [8, 8], strides = [1, 1]} : vector<16x96xbf16> to vector<8x8xbf16>
    %84 = vector.extract_strided_slice %48 {offsets = [8, 64], sizes = [8, 8], strides = [1, 1]} : vector<16x96xbf16> to vector<8x8xbf16>
    %85 = vector.extract_strided_slice %48 {offsets = [0, 72], sizes = [8, 8], strides = [1, 1]} : vector<16x96xbf16> to vector<8x8xbf16>
    %86 = vector.extract_strided_slice %48 {offsets = [8, 72], sizes = [8, 8], strides = [1, 1]} : vector<16x96xbf16> to vector<8x8xbf16>
    %87 = vector.extract_strided_slice %48 {offsets = [0, 80], sizes = [8, 8], strides = [1, 1]} : vector<16x96xbf16> to vector<8x8xbf16>
    %88 = vector.extract_strided_slice %48 {offsets = [8, 80], sizes = [8, 8], strides = [1, 1]} : vector<16x96xbf16> to vector<8x8xbf16>
    %89 = vector.extract_strided_slice %48 {offsets = [0, 88], sizes = [8, 8], strides = [1, 1]} : vector<16x96xbf16> to vector<8x8xbf16>
    %90 = vector.extract_strided_slice %48 {offsets = [8, 88], sizes = [8, 8], strides = [1, 1]} : vector<16x96xbf16> to vector<8x8xbf16>
    %91 = vector.shape_cast %83 : vector<8x8xbf16> to vector<1x8x8xbf16>
    %92 = vector.shape_cast %84 : vector<8x8xbf16> to vector<1x8x8xbf16>
    %93 = vector.shape_cast %85 : vector<8x8xbf16> to vector<1x8x8xbf16>
    %94 = vector.shape_cast %86 : vector<8x8xbf16> to vector<1x8x8xbf16>
    %95 = vector.shape_cast %87 : vector<8x8xbf16> to vector<1x8x8xbf16>
    %96 = vector.shape_cast %88 : vector<8x8xbf16> to vector<1x8x8xbf16>
    %97 = vector.shape_cast %89 : vector<8x8xbf16> to vector<1x8x8xbf16>
    %98 = vector.shape_cast %90 : vector<8x8xbf16> to vector<1x8x8xbf16>
    %99 = tpu.concatenate %91, %92, %93, %94, %95, %96, %97, %98 in 0 : vector<1x8x8xbf16>, vector<1x8x8xbf16>, vector<1x8x8xbf16>, vector<1x8x8xbf16>, vector<1x8x8xbf16>, vector<1x8x8xbf16>, vector<1x8x8xbf16>, vector<1x8x8xbf16> -> vector<8x8x8xbf16>
    "tpu.trace_start"() <{level = 10 : i32, message = "nqd,nkd->nqk"}> : () -> ()
    %cst_19 = arith.constant dense<0.000000e+00> : vector<8x8x8xf32>
    %100 = tpu.matmul %65, %82, %cst_19 {dimension_numbers = #tpu.dot_dimension_numbers<[2], [2], [1], [1], [0, 0, 0, 1, 1, 1], [0], [0]>} : vector<8x8x8xbf16>, vector<8x8x8xbf16>, vector<8x8x8xf32> -> vector<8x8x8xf32>
    "tpu.trace_stop"() : () -> ()
    %cst_20 = arith.constant 0.353553385 : f32
    %101 = vector.broadcast %cst_20 : f32 to vector<8x8x8xf32>
    %102 = arith.mulf %100, %101 : vector<8x8x8xf32>
    %103 = vector.shape_cast %9 : vector<8x8xf32> to vector<1x8x8xf32>
    %104 = vector.broadcast %103 : vector<1x8x8xf32> to vector<8x8x8xf32>
    %105 = arith.addf %102, %104 : vector<8x8x8xf32>
    %cst_21 = arith.constant dense<0xFF800000> : vector<8x8xf32>
    %106 = vector.multi_reduction <maximumf>, %105, %cst_21 [2] : vector<8x8x8xf32> to vector<8x8xf32>
    %107 = vector.shape_cast %106 : vector<8x8xf32> to vector<8x8x1xf32>
    %108 = vector.broadcast %107 : vector<8x8x1xf32> to vector<8x8x8xf32>
    %109 = arith.subf %105, %108 : vector<8x8x8xf32>
    %110 = math.exp %109 : vector<8x8x8xf32>
    %cst_22 = arith.constant dense<0.000000e+00> : vector<8x8xf32>
    %111 = vector.multi_reduction <add>, %110, %cst_22 [2] : vector<8x8x8xf32> to vector<8x8xf32>
    %112 = vector.shape_cast %111 : vector<8x8xf32> to vector<8x8x1xf32>
    %113 = vector.broadcast %112 : vector<8x8x1xf32> to vector<8x8x8xf32>
    %114 = arith.divf %110, %113 : vector<8x8x8xf32>
    %115 = arith.truncf %114 : vector<8x8x8xf32> to vector<8x8x8xbf16>
    "tpu.trace_start"() <{level = 10 : i32, message = "nqk,nkd->nqd"}> : () -> ()
    %cst_23 = arith.constant dense<0.000000e+00> : vector<8x8x8xf32>
    %116 = tpu.matmul %115, %99, %cst_23 {dimension_numbers = #tpu.dot_dimension_numbers<[2], [1], [1], [2], [0, 0, 0, 1, 1, 2], [0], [0]>} : vector<8x8x8xbf16>, vector<8x8x8xbf16>, vector<8x8x8xf32> -> vector<8x8x8xf32>
    "tpu.trace_stop"() : () -> ()
    %117 = vector.extract_strided_slice %116 {offsets = [0, 0, 0], sizes = [1, 8, 8], strides = [1, 1, 1]} : vector<8x8x8xf32> to vector<1x8x8xf32>
    %118 = vector.shape_cast %117 : vector<1x8x8xf32> to vector<8x8xf32>
    %119 = vector.extract_strided_slice %116 {offsets = [2, 0, 0], sizes = [1, 8, 8], strides = [1, 1, 1]} : vector<8x8x8xf32> to vector<1x8x8xf32>
    %120 = vector.shape_cast %119 : vector<1x8x8xf32> to vector<8x8xf32>
    %121 = vector.extract_strided_slice %116 {offsets = [4, 0, 0], sizes = [1, 8, 8], strides = [1, 1, 1]} : vector<8x8x8xf32> to vector<1x8x8xf32>
    %122 = vector.shape_cast %121 : vector<1x8x8xf32> to vector<8x8xf32>
    %123 = vector.extract_strided_slice %116 {offsets = [6, 0, 0], sizes = [1, 8, 8], strides = [1, 1, 1]} : vector<8x8x8xf32> to vector<1x8x8xf32>
    %124 = vector.shape_cast %123 : vector<1x8x8xf32> to vector<8x8xf32>
    %125 = tpu.concatenate %118, %120, %122, %124 in 1 : vector<8x8xf32>, vector<8x8xf32>, vector<8x8xf32>, vector<8x8xf32> -> vector<8x32xf32>
    %126 = vector.extract_strided_slice %116 {offsets = [1, 0, 0], sizes = [1, 8, 8], strides = [1, 1, 1]} : vector<8x8x8xf32> to vector<1x8x8xf32>
    %127 = vector.shape_cast %126 : vector<1x8x8xf32> to vector<8x8xf32>
    %128 = vector.extract_strided_slice %116 {offsets = [3, 0, 0], sizes = [1, 8, 8], strides = [1, 1, 1]} : vector<8x8x8xf32> to vector<1x8x8xf32>
    %129 = vector.shape_cast %128 : vector<1x8x8xf32> to vector<8x8xf32>
    %130 = vector.extract_strided_slice %116 {offsets = [5, 0, 0], sizes = [1, 8, 8], strides = [1, 1, 1]} : vector<8x8x8xf32> to vector<1x8x8xf32>
    %131 = vector.shape_cast %130 : vector<1x8x8xf32> to vector<8x8xf32>
    %132 = vector.extract_strided_slice %116 {offsets = [7, 0, 0], sizes = [1, 8, 8], strides = [1, 1, 1]} : vector<8x8x8xf32> to vector<1x8x8xf32>
    %133 = vector.shape_cast %132 : vector<1x8x8xf32> to vector<8x8xf32>
    %134 = tpu.concatenate %127, %129, %131, %133 in 1 : vector<8x8xf32>, vector<8x8xf32>, vector<8x8xf32>, vector<8x8xf32> -> vector<8x32xf32>
    %135 = tpu.concatenate %125, %134 in 0 : vector<8x32xf32>, vector<8x32xf32> -> vector<16x32xf32>
    %136 = arith.truncf %135 : vector<16x32xf32> to vector<16x32xbf16>
    %c0_24 = arith.constant 0 : index
    %c0_25 = arith.constant 0 : index
    %c0_26 = arith.constant 0 : index
    %137 = vector.load %arg5[%c0_24, %c0_25, %c0_26] : memref<2x32x32xbf16, #tpu.memory_space<vmem>>, vector<1x32x32xbf16>
    %138 = vector.shape_cast %137 : vector<1x32x32xbf16> to vector<32x32xbf16>
    %cst_27 = arith.constant dense<0.000000e+00> : vector<16x32xf32>
    %139 = tpu.matmul %136, %138, %cst_27 {dimension_numbers = #tpu.dot_dimension_numbers<[1], [0], [0], [1], [0, 0, 1, 1], [], []>} : vector<16x32xbf16>, vector<32x32xbf16>, vector<16x32xf32> -> vector<16x32xf32>
    %140 = arith.addf %3, %139 : vector<16x32xf32>
    %141 = vector.broadcast %16 : vector<1x32xf32> to vector<16x32xf32>
    %142 = arith.addf %140, %141 : vector<16x32xf32>
    %cst_28 = arith.constant dense<0.000000e+00> : vector<16xf32>
    %143 = vector.multi_reduction <add>, %142, %cst_28 [1] : vector<16x32xf32> to vector<16xf32>
    %144 = vector.shape_cast %143 : vector<16xf32> to vector<16x1xf32>
    %cst_29 = arith.constant 3.200000e+01 : f32
    %145 = vector.broadcast %cst_29 : f32 to vector<16x1xf32>
    %146 = arith.divf %144, %145 : vector<16x1xf32>
    %147 = vector.broadcast %146 : vector<16x1xf32> to vector<16x32xf32>
    %148 = arith.subf %142, %147 : vector<16x32xf32>
    %149 = arith.mulf %148, %148 : vector<16x32xf32>
    %cst_30 = arith.constant dense<0.000000e+00> : vector<16xf32>
    %150 = vector.multi_reduction <add>, %149, %cst_30 [1] : vector<16x32xf32> to vector<16xf32>
    %151 = vector.shape_cast %150 : vector<16xf32> to vector<16x1xf32>
    %cst_31 = arith.constant 3.200000e+01 : f32
    %152 = vector.broadcast %cst_31 : f32 to vector<16x1xf32>
    %153 = arith.divf %151, %152 : vector<16x1xf32>
    %154 = vector.broadcast %146 : vector<16x1xf32> to vector<16x32xf32>
    %155 = arith.subf %142, %154 : vector<16x32xf32>
    %cst_32 = arith.constant 9.99999974E-6 : f32
    %156 = vector.broadcast %cst_32 : f32 to vector<16x1xf32>
    %157 = arith.addf %153, %156 : vector<16x1xf32>
    %158 = math.rsqrt %157 : vector<16x1xf32>
    %159 = vector.broadcast %158 : vector<16x1xf32> to vector<16x32xf32>
    %160 = arith.mulf %155, %159 : vector<16x32xf32>
    %161 = vector.broadcast %14 : vector<1x32xf32> to vector<16x32xf32>
    %162 = arith.mulf %160, %161 : vector<16x32xf32>
    %163 = vector.broadcast %15 : vector<1x32xf32> to vector<16x32xf32>
    %164 = arith.addf %162, %163 : vector<16x32xf32>
    %165 = arith.truncf %164 : vector<16x32xf32> to vector<16x32xbf16>
    %c0_33 = arith.constant 0 : index
    %c0_34 = arith.constant 0 : index
    %c0_35 = arith.constant 0 : index
    %166 = vector.load %arg6[%c0_33, %c0_34, %c0_35] : memref<2x32x128xbf16, #tpu.memory_space<vmem>>, vector<1x32x128xbf16>
    %167 = vector.shape_cast %166 : vector<1x32x128xbf16> to vector<32x128xbf16>
    %cst_36 = arith.constant dense<0.000000e+00> : vector<16x128xf32>
    %168 = tpu.matmul %165, %167, %cst_36 {dimension_numbers = #tpu.dot_dimension_numbers<[1], [0], [0], [1], [0, 0, 1, 1], [], []>} : vector<16x32xbf16>, vector<32x128xbf16>, vector<16x128xf32> -> vector<16x128xf32>
    %c0_37 = arith.constant 0 : index
    %c0_38 = arith.constant 0 : index
    %c0_39 = arith.constant 0 : index
    %169 = vector.load %arg9[%c0_37, %c0_38, %c0_39] : memref<2x1x128xf32, #tpu.memory_space<vmem>>, vector<1x1x128xf32>
    %170 = vector.shape_cast %169 : vector<1x1x128xf32> to vector<1x128xf32>
    %171 = vector.broadcast %170 : vector<1x128xf32> to vector<16x128xf32>
    %172 = arith.addf %168, %171 : vector<16x128xf32>
    %cst_40 = arith.constant 1.702000e+00 : f32
    %173 = vector.broadcast %cst_40 : f32 to vector<16x128xf32>
    %174 = arith.mulf %173, %172 : vector<16x128xf32>
    %175 = arith.negf %174 : vector<16x128xf32>
    %176 = math.exp %175 : vector<16x128xf32>
    %cst_41 = arith.constant 1.000000e+00 : f32
    %177 = vector.broadcast %cst_41 : f32 to vector<16x128xf32>
    %178 = arith.addf %177, %176 : vector<16x128xf32>
    %179 = arith.divf %177, %178 : vector<16x128xf32>
    %180 = arith.mulf %172, %179 : vector<16x128xf32>
    %181 = arith.truncf %180 : vector<16x128xf32> to vector<16x128xbf16>
    %c0_42 = arith.constant 0 : index
    %c0_43 = arith.constant 0 : index
    %c0_44 = arith.constant 0 : index
    %182 = vector.load %arg7[%c0_42, %c0_43, %c0_44] : memref<2x128x32xbf16, #tpu.memory_space<vmem>>, vector<1x128x32xbf16>
    %183 = vector.shape_cast %182 : vector<1x128x32xbf16> to vector<128x32xbf16>
    %cst_45 = arith.constant dense<0.000000e+00> : vector<16x32xf32>
    %184 = tpu.matmul %181, %183, %cst_45 {dimension_numbers = #tpu.dot_dimension_numbers<[1], [0], [0], [1], [0, 0, 1, 1], [], []>} : vector<16x128xbf16>, vector<128x32xbf16>, vector<16x32xf32> -> vector<16x32xf32>
    %185 = arith.addf %142, %184 : vector<16x32xf32>
    %186 = vector.broadcast %17 : vector<1x32xf32> to vector<16x32xf32>
    %187 = arith.addf %185, %186 : vector<16x32xf32>
    %c1 = arith.constant 1 : index
    %c0_46 = arith.constant 0 : index
    %c0_47 = arith.constant 0 : index
    %188 = vector.load %arg10[%c1, %c0_46, %c0_47] : memref<2x6x32xf32, #tpu.memory_space<vmem>>, vector<1x6x32xf32>
    %189 = vector.shape_cast %188 : vector<1x6x32xf32> to vector<6x32xf32>
    %190 = vector.extract_strided_slice %189 {offsets = [0, 0], sizes = [1, 32], strides = [1, 1]} : vector<6x32xf32> to vector<1x32xf32>
    %191 = vector.extract_strided_slice %189 {offsets = [1, 0], sizes = [1, 32], strides = [1, 1]} : vector<6x32xf32> to vector<1x32xf32>
    %192 = vector.extract_strided_slice %189 {offsets = [2, 0], sizes = [1, 32], strides = [1, 1]} : vector<6x32xf32> to vector<1x32xf32>
    %193 = vector.extract_strided_slice %189 {offsets = [3, 0], sizes = [1, 32], strides = [1, 1]} : vector<6x32xf32> to vector<1x32xf32>
    %194 = vector.extract_strided_slice %189 {offsets = [4, 0], sizes = [1, 32], strides = [1, 1]} : vector<6x32xf32> to vector<1x32xf32>
    %195 = vector.extract_strided_slice %189 {offsets = [5, 0], sizes = [1, 32], strides = [1, 1]} : vector<6x32xf32> to vector<1x32xf32>
    %cst_48 = arith.constant dense<0.000000e+00> : vector<16xf32>
    %196 = vector.multi_reduction <add>, %187, %cst_48 [1] : vector<16x32xf32> to vector<16xf32>
    %197 = vector.shape_cast %196 : vector<16xf32> to vector<16x1xf32>
    %cst_49 = arith.constant 3.200000e+01 : f32
    %198 = vector.broadcast %cst_49 : f32 to vector<16x1xf32>
    %199 = arith.divf %197, %198 : vector<16x1xf32>
    %200 = vector.broadcast %199 : vector<16x1xf32> to vector<16x32xf32>
    %201 = arith.subf %187, %200 : vector<16x32xf32>
    %202 = arith.mulf %201, %201 : vector<16x32xf32>
    %cst_50 = arith.constant dense<0.000000e+00> : vector<16xf32>
    %203 = vector.multi_reduction <add>, %202, %cst_50 [1] : vector<16x32xf32> to vector<16xf32>
    %204 = vector.shape_cast %203 : vector<16xf32> to vector<16x1xf32>
    %cst_51 = arith.constant 3.200000e+01 : f32
    %205 = vector.broadcast %cst_51 : f32 to vector<16x1xf32>
    %206 = arith.divf %204, %205 : vector<16x1xf32>
    %207 = vector.broadcast %199 : vector<16x1xf32> to vector<16x32xf32>
    %208 = arith.subf %187, %207 : vector<16x32xf32>
    %cst_52 = arith.constant 9.99999974E-6 : f32
    %209 = vector.broadcast %cst_52 : f32 to vector<16x1xf32>
    %210 = arith.addf %206, %209 : vector<16x1xf32>
    %211 = math.rsqrt %210 : vector<16x1xf32>
    %212 = vector.broadcast %211 : vector<16x1xf32> to vector<16x32xf32>
    %213 = arith.mulf %208, %212 : vector<16x32xf32>
    %214 = vector.broadcast %190 : vector<1x32xf32> to vector<16x32xf32>
    %215 = arith.mulf %213, %214 : vector<16x32xf32>
    %216 = vector.broadcast %191 : vector<1x32xf32> to vector<16x32xf32>
    %217 = arith.addf %215, %216 : vector<16x32xf32>
    %218 = arith.truncf %217 : vector<16x32xf32> to vector<16x32xbf16>
    %c1_53 = arith.constant 1 : index
    %c0_54 = arith.constant 0 : index
    %c0_55 = arith.constant 0 : index
    %219 = vector.load %arg4[%c1_53, %c0_54, %c0_55] : memref<2x32x96xbf16, #tpu.memory_space<vmem>>, vector<1x32x96xbf16>
    %220 = vector.shape_cast %219 : vector<1x32x96xbf16> to vector<32x96xbf16>
    %cst_56 = arith.constant dense<0.000000e+00> : vector<16x96xf32>
    %221 = tpu.matmul %218, %220, %cst_56 {dimension_numbers = #tpu.dot_dimension_numbers<[1], [0], [0], [1], [0, 0, 1, 1], [], []>} : vector<16x32xbf16>, vector<32x96xbf16>, vector<16x96xf32> -> vector<16x96xf32>
    %c1_57 = arith.constant 1 : index
    %c0_58 = arith.constant 0 : index
    %c0_59 = arith.constant 0 : index
    %222 = vector.load %arg8[%c1_57, %c0_58, %c0_59] : memref<2x1x96xf32, #tpu.memory_space<vmem>>, vector<1x1x96xf32>
    %223 = vector.shape_cast %222 : vector<1x1x96xf32> to vector<1x96xf32>
    %224 = vector.broadcast %223 : vector<1x96xf32> to vector<16x96xf32>
    %225 = arith.addf %221, %224 : vector<16x96xf32>
    %226 = arith.truncf %225 : vector<16x96xf32> to vector<16x96xbf16>
    %227 = vector.extract_strided_slice %226 {offsets = [0, 0], sizes = [8, 8], strides = [1, 1]} : vector<16x96xbf16> to vector<8x8xbf16>
    %228 = vector.extract_strided_slice %226 {offsets = [8, 0], sizes = [8, 8], strides = [1, 1]} : vector<16x96xbf16> to vector<8x8xbf16>
    %229 = vector.extract_strided_slice %226 {offsets = [0, 8], sizes = [8, 8], strides = [1, 1]} : vector<16x96xbf16> to vector<8x8xbf16>
    %230 = vector.extract_strided_slice %226 {offsets = [8, 8], sizes = [8, 8], strides = [1, 1]} : vector<16x96xbf16> to vector<8x8xbf16>
    %231 = vector.extract_strided_slice %226 {offsets = [0, 16], sizes = [8, 8], strides = [1, 1]} : vector<16x96xbf16> to vector<8x8xbf16>
    %232 = vector.extract_strided_slice %226 {offsets = [8, 16], sizes = [8, 8], strides = [1, 1]} : vector<16x96xbf16> to vector<8x8xbf16>
    %233 = vector.extract_strided_slice %226 {offsets = [0, 24], sizes = [8, 8], strides = [1, 1]} : vector<16x96xbf16> to vector<8x8xbf16>
    %234 = vector.extract_strided_slice %226 {offsets = [8, 24], sizes = [8, 8], strides = [1, 1]} : vector<16x96xbf16> to vector<8x8xbf16>
    %235 = vector.shape_cast %227 : vector<8x8xbf16> to vector<1x8x8xbf16>
    %236 = vector.shape_cast %228 : vector<8x8xbf16> to vector<1x8x8xbf16>
    %237 = vector.shape_cast %229 : vector<8x8xbf16> to vector<1x8x8xbf16>
    %238 = vector.shape_cast %230 : vector<8x8xbf16> to vector<1x8x8xbf16>
    %239 = vector.shape_cast %231 : vector<8x8xbf16> to vector<1x8x8xbf16>
    %240 = vector.shape_cast %232 : vector<8x8xbf16> to vector<1x8x8xbf16>
    %241 = vector.shape_cast %233 : vector<8x8xbf16> to vector<1x8x8xbf16>
    %242 = vector.shape_cast %234 : vector<8x8xbf16> to vector<1x8x8xbf16>
    %243 = tpu.concatenate %235, %236, %237, %238, %239, %240, %241, %242 in 0 : vector<1x8x8xbf16>, vector<1x8x8xbf16>, vector<1x8x8xbf16>, vector<1x8x8xbf16>, vector<1x8x8xbf16>, vector<1x8x8xbf16>, vector<1x8x8xbf16>, vector<1x8x8xbf16> -> vector<8x8x8xbf16>
    %244 = vector.extract_strided_slice %226 {offsets = [0, 32], sizes = [8, 8], strides = [1, 1]} : vector<16x96xbf16> to vector<8x8xbf16>
    %245 = vector.extract_strided_slice %226 {offsets = [8, 32], sizes = [8, 8], strides = [1, 1]} : vector<16x96xbf16> to vector<8x8xbf16>
    %246 = vector.extract_strided_slice %226 {offsets = [0, 40], sizes = [8, 8], strides = [1, 1]} : vector<16x96xbf16> to vector<8x8xbf16>
    %247 = vector.extract_strided_slice %226 {offsets = [8, 40], sizes = [8, 8], strides = [1, 1]} : vector<16x96xbf16> to vector<8x8xbf16>
    %248 = vector.extract_strided_slice %226 {offsets = [0, 48], sizes = [8, 8], strides = [1, 1]} : vector<16x96xbf16> to vector<8x8xbf16>
    %249 = vector.extract_strided_slice %226 {offsets = [8, 48], sizes = [8, 8], strides = [1, 1]} : vector<16x96xbf16> to vector<8x8xbf16>
    %250 = vector.extract_strided_slice %226 {offsets = [0, 56], sizes = [8, 8], strides = [1, 1]} : vector<16x96xbf16> to vector<8x8xbf16>
    %251 = vector.extract_strided_slice %226 {offsets = [8, 56], sizes = [8, 8], strides = [1, 1]} : vector<16x96xbf16> to vector<8x8xbf16>
    %252 = vector.shape_cast %244 : vector<8x8xbf16> to vector<1x8x8xbf16>
    %253 = vector.shape_cast %245 : vector<8x8xbf16> to vector<1x8x8xbf16>
    %254 = vector.shape_cast %246 : vector<8x8xbf16> to vector<1x8x8xbf16>
    %255 = vector.shape_cast %247 : vector<8x8xbf16> to vector<1x8x8xbf16>
    %256 = vector.shape_cast %248 : vector<8x8xbf16> to vector<1x8x8xbf16>
    %257 = vector.shape_cast %249 : vector<8x8xbf16> to vector<1x8x8xbf16>
    %258 = vector.shape_cast %250 : vector<8x8xbf16> to vector<1x8x8xbf16>
    %259 = vector.shape_cast %251 : vector<8x8xbf16> to vector<1x8x8xbf16>
    %260 = tpu.concatenate %252, %253, %254, %255, %256, %257, %258, %259 in 0 : vector<1x8x8xbf16>, vector<1x8x8xbf16>, vector<1x8x8xbf16>, vector<1x8x8xbf16>, vector<1x8x8xbf16>, vector<1x8x8xbf16>, vector<1x8x8xbf16>, vector<1x8x8xbf16> -> vector<8x8x8xbf16>
    %261 = vector.extract_strided_slice %226 {offsets = [0, 64], sizes = [8, 8], strides = [1, 1]} : vector<16x96xbf16> to vector<8x8xbf16>
    %262 = vector.extract_strided_slice %226 {offsets = [8, 64], sizes = [8, 8], strides = [1, 1]} : vector<16x96xbf16> to vector<8x8xbf16>
    %263 = vector.extract_strided_slice %226 {offsets = [0, 72], sizes = [8, 8], strides = [1, 1]} : vector<16x96xbf16> to vector<8x8xbf16>
    %264 = vector.extract_strided_slice %226 {offsets = [8, 72], sizes = [8, 8], strides = [1, 1]} : vector<16x96xbf16> to vector<8x8xbf16>
    %265 = vector.extract_strided_slice %226 {offsets = [0, 80], sizes = [8, 8], strides = [1, 1]} : vector<16x96xbf16> to vector<8x8xbf16>
    %266 = vector.extract_strided_slice %226 {offsets = [8, 80], sizes = [8, 8], strides = [1, 1]} : vector<16x96xbf16> to vector<8x8xbf16>
    %267 = vector.extract_strided_slice %226 {offsets = [0, 88], sizes = [8, 8], strides = [1, 1]} : vector<16x96xbf16> to vector<8x8xbf16>
    %268 = vector.extract_strided_slice %226 {offsets = [8, 88], sizes = [8, 8], strides = [1, 1]} : vector<16x96xbf16> to vector<8x8xbf16>
    %269 = vector.shape_cast %261 : vector<8x8xbf16> to vector<1x8x8xbf16>
    %270 = vector.shape_cast %262 : vector<8x8xbf16> to vector<1x8x8xbf16>
    %271 = vector.shape_cast %263 : vector<8x8xbf16> to vector<1x8x8xbf16>
    %272 = vector.shape_cast %264 : vector<8x8xbf16> to vector<1x8x8xbf16>
    %273 = vector.shape_cast %265 : vector<8x8xbf16> to vector<1x8x8xbf16>
    %274 = vector.shape_cast %266 : vector<8x8xbf16> to vector<1x8x8xbf16>
    %275 = vector.shape_cast %267 : vector<8x8xbf16> to vector<1x8x8xbf16>
    %276 = vector.shape_cast %268 : vector<8x8xbf16> to vector<1x8x8xbf16>
    %277 = tpu.concatenate %269, %270, %271, %272, %273, %274, %275, %276 in 0 : vector<1x8x8xbf16>, vector<1x8x8xbf16>, vector<1x8x8xbf16>, vector<1x8x8xbf16>, vector<1x8x8xbf16>, vector<1x8x8xbf16>, vector<1x8x8xbf16>, vector<1x8x8xbf16> -> vector<8x8x8xbf16>
    "tpu.trace_start"() <{level = 10 : i32, message = "nqd,nkd->nqk"}> : () -> ()
    %cst_60 = arith.constant dense<0.000000e+00> : vector<8x8x8xf32>
    %278 = tpu.matmul %243, %260, %cst_60 {dimension_numbers = #tpu.dot_dimension_numbers<[2], [2], [1], [1], [0, 0, 0, 1, 1, 1], [0], [0]>} : vector<8x8x8xbf16>, vector<8x8x8xbf16>, vector<8x8x8xf32> -> vector<8x8x8xf32>
    "tpu.trace_stop"() : () -> ()
    %cst_61 = arith.constant 0.353553385 : f32
    %279 = vector.broadcast %cst_61 : f32 to vector<8x8x8xf32>
    %280 = arith.mulf %278, %279 : vector<8x8x8xf32>
    %281 = vector.shape_cast %9 : vector<8x8xf32> to vector<1x8x8xf32>
    %282 = vector.broadcast %281 : vector<1x8x8xf32> to vector<8x8x8xf32>
    %283 = arith.addf %280, %282 : vector<8x8x8xf32>
    %cst_62 = arith.constant dense<0xFF800000> : vector<8x8xf32>
    %284 = vector.multi_reduction <maximumf>, %283, %cst_62 [2] : vector<8x8x8xf32> to vector<8x8xf32>
    %285 = vector.shape_cast %284 : vector<8x8xf32> to vector<8x8x1xf32>
    %286 = vector.broadcast %285 : vector<8x8x1xf32> to vector<8x8x8xf32>
    %287 = arith.subf %283, %286 : vector<8x8x8xf32>
    %288 = math.exp %287 : vector<8x8x8xf32>
    %cst_63 = arith.constant dense<0.000000e+00> : vector<8x8xf32>
    %289 = vector.multi_reduction <add>, %288, %cst_63 [2] : vector<8x8x8xf32> to vector<8x8xf32>
    %290 = vector.shape_cast %289 : vector<8x8xf32> to vector<8x8x1xf32>
    %291 = vector.broadcast %290 : vector<8x8x1xf32> to vector<8x8x8xf32>
    %292 = arith.divf %288, %291 : vector<8x8x8xf32>
    %293 = arith.truncf %292 : vector<8x8x8xf32> to vector<8x8x8xbf16>
    "tpu.trace_start"() <{level = 10 : i32, message = "nqk,nkd->nqd"}> : () -> ()
    %cst_64 = arith.constant dense<0.000000e+00> : vector<8x8x8xf32>
    %294 = tpu.matmul %293, %277, %cst_64 {dimension_numbers = #tpu.dot_dimension_numbers<[2], [1], [1], [2], [0, 0, 0, 1, 1, 2], [0], [0]>} : vector<8x8x8xbf16>, vector<8x8x8xbf16>, vector<8x8x8xf32> -> vector<8x8x8xf32>
    "tpu.trace_stop"() : () -> ()
    %295 = vector.extract_strided_slice %294 {offsets = [0, 0, 0], sizes = [1, 8, 8], strides = [1, 1, 1]} : vector<8x8x8xf32> to vector<1x8x8xf32>
    %296 = vector.shape_cast %295 : vector<1x8x8xf32> to vector<8x8xf32>
    %297 = vector.extract_strided_slice %294 {offsets = [2, 0, 0], sizes = [1, 8, 8], strides = [1, 1, 1]} : vector<8x8x8xf32> to vector<1x8x8xf32>
    %298 = vector.shape_cast %297 : vector<1x8x8xf32> to vector<8x8xf32>
    %299 = vector.extract_strided_slice %294 {offsets = [4, 0, 0], sizes = [1, 8, 8], strides = [1, 1, 1]} : vector<8x8x8xf32> to vector<1x8x8xf32>
    %300 = vector.shape_cast %299 : vector<1x8x8xf32> to vector<8x8xf32>
    %301 = vector.extract_strided_slice %294 {offsets = [6, 0, 0], sizes = [1, 8, 8], strides = [1, 1, 1]} : vector<8x8x8xf32> to vector<1x8x8xf32>
    %302 = vector.shape_cast %301 : vector<1x8x8xf32> to vector<8x8xf32>
    %303 = tpu.concatenate %296, %298, %300, %302 in 1 : vector<8x8xf32>, vector<8x8xf32>, vector<8x8xf32>, vector<8x8xf32> -> vector<8x32xf32>
    %304 = vector.extract_strided_slice %294 {offsets = [1, 0, 0], sizes = [1, 8, 8], strides = [1, 1, 1]} : vector<8x8x8xf32> to vector<1x8x8xf32>
    %305 = vector.shape_cast %304 : vector<1x8x8xf32> to vector<8x8xf32>
    %306 = vector.extract_strided_slice %294 {offsets = [3, 0, 0], sizes = [1, 8, 8], strides = [1, 1, 1]} : vector<8x8x8xf32> to vector<1x8x8xf32>
    %307 = vector.shape_cast %306 : vector<1x8x8xf32> to vector<8x8xf32>
    %308 = vector.extract_strided_slice %294 {offsets = [5, 0, 0], sizes = [1, 8, 8], strides = [1, 1, 1]} : vector<8x8x8xf32> to vector<1x8x8xf32>
    %309 = vector.shape_cast %308 : vector<1x8x8xf32> to vector<8x8xf32>
    %310 = vector.extract_strided_slice %294 {offsets = [7, 0, 0], sizes = [1, 8, 8], strides = [1, 1, 1]} : vector<8x8x8xf32> to vector<1x8x8xf32>
    %311 = vector.shape_cast %310 : vector<1x8x8xf32> to vector<8x8xf32>
    %312 = tpu.concatenate %305, %307, %309, %311 in 1 : vector<8x8xf32>, vector<8x8xf32>, vector<8x8xf32>, vector<8x8xf32> -> vector<8x32xf32>
    %313 = tpu.concatenate %303, %312 in 0 : vector<8x32xf32>, vector<8x32xf32> -> vector<16x32xf32>
    %314 = arith.truncf %313 : vector<16x32xf32> to vector<16x32xbf16>
    %c1_65 = arith.constant 1 : index
    %c0_66 = arith.constant 0 : index
    %c0_67 = arith.constant 0 : index
    %315 = vector.load %arg5[%c1_65, %c0_66, %c0_67] : memref<2x32x32xbf16, #tpu.memory_space<vmem>>, vector<1x32x32xbf16>
    %316 = vector.shape_cast %315 : vector<1x32x32xbf16> to vector<32x32xbf16>
    %cst_68 = arith.constant dense<0.000000e+00> : vector<16x32xf32>
    %317 = tpu.matmul %314, %316, %cst_68 {dimension_numbers = #tpu.dot_dimension_numbers<[1], [0], [0], [1], [0, 0, 1, 1], [], []>} : vector<16x32xbf16>, vector<32x32xbf16>, vector<16x32xf32> -> vector<16x32xf32>
    %318 = arith.addf %187, %317 : vector<16x32xf32>
    %319 = vector.broadcast %194 : vector<1x32xf32> to vector<16x32xf32>
    %320 = arith.addf %318, %319 : vector<16x32xf32>
    %cst_69 = arith.constant dense<0.000000e+00> : vector<16xf32>
    %321 = vector.multi_reduction <add>, %320, %cst_69 [1] : vector<16x32xf32> to vector<16xf32>
    %322 = vector.shape_cast %321 : vector<16xf32> to vector<16x1xf32>
    %cst_70 = arith.constant 3.200000e+01 : f32
    %323 = vector.broadcast %cst_70 : f32 to vector<16x1xf32>
    %324 = arith.divf %322, %323 : vector<16x1xf32>
    %325 = vector.broadcast %324 : vector<16x1xf32> to vector<16x32xf32>
    %326 = arith.subf %320, %325 : vector<16x32xf32>
    %327 = arith.mulf %326, %326 : vector<16x32xf32>
    %cst_71 = arith.constant dense<0.000000e+00> : vector<16xf32>
    %328 = vector.multi_reduction <add>, %327, %cst_71 [1] : vector<16x32xf32> to vector<16xf32>
    %329 = vector.shape_cast %328 : vector<16xf32> to vector<16x1xf32>
    %cst_72 = arith.constant 3.200000e+01 : f32
    %330 = vector.broadcast %cst_72 : f32 to vector<16x1xf32>
    %331 = arith.divf %329, %330 : vector<16x1xf32>
    %332 = vector.broadcast %324 : vector<16x1xf32> to vector<16x32xf32>
    %333 = arith.subf %320, %332 : vector<16x32xf32>
    %cst_73 = arith.constant 9.99999974E-6 : f32
    %334 = vector.broadcast %cst_73 : f32 to vector<16x1xf32>
    %335 = arith.addf %331, %334 : vector<16x1xf32>
    %336 = math.rsqrt %335 : vector<16x1xf32>
    %337 = vector.broadcast %336 : vector<16x1xf32> to vector<16x32xf32>
    %338 = arith.mulf %333, %337 : vector<16x32xf32>
    %339 = vector.broadcast %192 : vector<1x32xf32> to vector<16x32xf32>
    %340 = arith.mulf %338, %339 : vector<16x32xf32>
    %341 = vector.broadcast %193 : vector<1x32xf32> to vector<16x32xf32>
    %342 = arith.addf %340, %341 : vector<16x32xf32>
    %343 = arith.truncf %342 : vector<16x32xf32> to vector<16x32xbf16>
    %c1_74 = arith.constant 1 : index
    %c0_75 = arith.constant 0 : index
    %c0_76 = arith.constant 0 : index
    %344 = vector.load %arg6[%c1_74, %c0_75, %c0_76] : memref<2x32x128xbf16, #tpu.memory_space<vmem>>, vector<1x32x128xbf16>
    %345 = vector.shape_cast %344 : vector<1x32x128xbf16> to vector<32x128xbf16>
    %cst_77 = arith.constant dense<0.000000e+00> : vector<16x128xf32>
    %346 = tpu.matmul %343, %345, %cst_77 {dimension_numbers = #tpu.dot_dimension_numbers<[1], [0], [0], [1], [0, 0, 1, 1], [], []>} : vector<16x32xbf16>, vector<32x128xbf16>, vector<16x128xf32> -> vector<16x128xf32>
    %c1_78 = arith.constant 1 : index
    %c0_79 = arith.constant 0 : index
    %c0_80 = arith.constant 0 : index
    %347 = vector.load %arg9[%c1_78, %c0_79, %c0_80] : memref<2x1x128xf32, #tpu.memory_space<vmem>>, vector<1x1x128xf32>
    %348 = vector.shape_cast %347 : vector<1x1x128xf32> to vector<1x128xf32>
    %349 = vector.broadcast %348 : vector<1x128xf32> to vector<16x128xf32>
    %350 = arith.addf %346, %349 : vector<16x128xf32>
    %cst_81 = arith.constant 1.702000e+00 : f32
    %351 = vector.broadcast %cst_81 : f32 to vector<16x128xf32>
    %352 = arith.mulf %351, %350 : vector<16x128xf32>
    %353 = arith.negf %352 : vector<16x128xf32>
    %354 = math.exp %353 : vector<16x128xf32>
    %cst_82 = arith.constant 1.000000e+00 : f32
    %355 = vector.broadcast %cst_82 : f32 to vector<16x128xf32>
    %356 = arith.addf %355, %354 : vector<16x128xf32>
    %357 = arith.divf %355, %356 : vector<16x128xf32>
    %358 = arith.mulf %350, %357 : vector<16x128xf32>
    %359 = arith.truncf %358 : vector<16x128xf32> to vector<16x128xbf16>
    %c1_83 = arith.constant 1 : index
    %c0_84 = arith.constant 0 : index
    %c0_85 = arith.constant 0 : index
    %360 = vector.load %arg7[%c1_83, %c0_84, %c0_85] : memref<2x128x32xbf16, #tpu.memory_space<vmem>>, vector<1x128x32xbf16>
    %361 = vector.shape_cast %360 : vector<1x128x32xbf16> to vector<128x32xbf16>
    %cst_86 = arith.constant dense<0.000000e+00> : vector<16x32xf32>
    %362 = tpu.matmul %359, %361, %cst_86 {dimension_numbers = #tpu.dot_dimension_numbers<[1], [0], [0], [1], [0, 0, 1, 1], [], []>} : vector<16x128xbf16>, vector<128x32xbf16>, vector<16x32xf32> -> vector<16x32xf32>
    %363 = arith.addf %320, %362 : vector<16x32xf32>
    %364 = vector.broadcast %195 : vector<1x32xf32> to vector<16x32xf32>
    %365 = arith.addf %363, %364 : vector<16x32xf32>
    %366 = tpu.iota {dimensions = array<i32: 0>} : vector<2x16xi32>
    %367 = tpu.iota {dimensions = array<i32: 1>} : vector<2x16xi32>
    %c0_87 = arith.constant 0 : index
    %c0_88 = arith.constant 0 : index
    %368 = vector.load %arg3[%c0_87, %c0_88] : memref<2x1xi32, #tpu.memory_space<vmem>>, vector<2x1xi32>
    %c8_i32 = arith.constant 8 : i32
    %369 = vector.broadcast %c8_i32 : i32 to vector<2x16xi32>
    %370 = arith.muli %366, %369 : vector<2x16xi32>
    %371 = vector.broadcast %368 : vector<2x1xi32> to vector<2x16xi32>
    %372 = arith.addi %371, %370 : vector<2x16xi32>
    %373 = arith.cmpi eq, %367, %372 : vector<2x16xi32>
    %374 = arith.extui %373 : vector<2x16xi1> to vector<2x16xi32>
    %375 = arith.sitofp %374 : vector<2x16xi32> to vector<2x16xf32>
    %cst_89 = arith.constant dense<0.000000e+00> : vector<2x32xf32>
    %376 = tpu.matmul %375, %365, %cst_89 {dimension_numbers = #tpu.dot_dimension_numbers<[1], [0], [0], [1], [0, 0, 1, 1], [], []>, precision = #tpu.contract_precision<fp32>} : vector<2x16xf32>, vector<16x32xf32>, vector<2x32xf32> -> vector<2x32xf32>
    %c0_90 = arith.constant 0 : index
    %c0_91 = arith.constant 0 : index
    %377 = vector.load %arg11[%c0_90, %c0_91] : memref<2x32xf32, #tpu.memory_space<vmem>>, vector<2x32xf32>
    %378 = vector.extract_strided_slice %377 {offsets = [0, 0], sizes = [1, 32], strides = [1, 1]} : vector<2x32xf32> to vector<1x32xf32>
    %379 = vector.extract_strided_slice %377 {offsets = [1, 0], sizes = [1, 32], strides = [1, 1]} : vector<2x32xf32> to vector<1x32xf32>
    %cst_92 = arith.constant dense<0.000000e+00> : vector<2xf32>
    %380 = vector.multi_reduction <add>, %376, %cst_92 [1] : vector<2x32xf32> to vector<2xf32>
    %381 = vector.shape_cast %380 : vector<2xf32> to vector<2x1xf32>
    %cst_93 = arith.constant 3.200000e+01 : f32
    %382 = vector.broadcast %cst_93 : f32 to vector<2x1xf32>
    %383 = arith.divf %381, %382 : vector<2x1xf32>
    %384 = vector.broadcast %383 : vector<2x1xf32> to vector<2x32xf32>
    %385 = arith.subf %376, %384 : vector<2x32xf32>
    %386 = arith.mulf %385, %385 : vector<2x32xf32>
    %cst_94 = arith.constant dense<0.000000e+00> : vector<2xf32>
    %387 = vector.multi_reduction <add>, %386, %cst_94 [1] : vector<2x32xf32> to vector<2xf32>
    %388 = vector.shape_cast %387 : vector<2xf32> to vector<2x1xf32>
    %cst_95 = arith.constant 3.200000e+01 : f32
    %389 = vector.broadcast %cst_95 : f32 to vector<2x1xf32>
    %390 = arith.divf %388, %389 : vector<2x1xf32>
    %391 = vector.broadcast %383 : vector<2x1xf32> to vector<2x32xf32>
    %392 = arith.subf %376, %391 : vector<2x32xf32>
    %cst_96 = arith.constant 9.99999974E-6 : f32
    %393 = vector.broadcast %cst_96 : f32 to vector<2x1xf32>
    %394 = arith.addf %390, %393 : vector<2x1xf32>
    %395 = math.rsqrt %394 : vector<2x1xf32>
    %396 = vector.broadcast %395 : vector<2x1xf32> to vector<2x32xf32>
    %397 = arith.mulf %392, %396 : vector<2x32xf32>
    %398 = vector.broadcast %378 : vector<1x32xf32> to vector<2x32xf32>
    %399 = arith.mulf %397, %398 : vector<2x32xf32>
    %400 = vector.broadcast %379 : vector<1x32xf32> to vector<2x32xf32>
    %401 = arith.addf %399, %400 : vector<2x32xf32>
    %402 = arith.truncf %401 : vector<2x32xf32> to vector<2x32xbf16>
    %c0_97 = arith.constant 0 : index
    %c0_98 = arith.constant 0 : index
    %403 = vector.load %arg12[%c0_97, %c0_98] : memref<32x32xbf16, #tpu.memory_space<vmem>>, vector<32x32xbf16>
    %cst_99 = arith.constant dense<0.000000e+00> : vector<2x32xf32>
    %404 = tpu.matmul %402, %403, %cst_99 {dimension_numbers = #tpu.dot_dimension_numbers<[1], [0], [0], [1], [0, 0, 1, 1], [], []>} : vector<2x32xbf16>, vector<32x32xbf16>, vector<2x32xf32> -> vector<2x32xf32>
    %c0_100 = arith.constant 0 : index
    %c0_101 = arith.constant 0 : index
    %405 = vector.load %arg13[%c0_100, %c0_101] : memref<2x32xf32, #tpu.memory_space<vmem>>, vector<2x32xf32>
    tpu.vector_store %arg13[%c0_100, %c0_101], %404 {strides = array<i32>} : memref<2x32xf32, #tpu.memory_space<vmem>>, vector<2x32xf32>,
    return
  }
  func.func @transform_0(%arg0: i32) -> (i32, i32) {
    %c0_i32 = arith.constant 0 : i32
    %c0_i32_0 = arith.constant 0 : i32
    %c0_i32_1 = arith.constant 0 : i32
    return %c0_i32, %c0_i32_0 : i32, i32
  }
  func.func @transform_1(%arg0: i32) -> (i32, i32) {
    %c0_i32 = arith.constant 0 : i32
    %c0_i32_0 = arith.constant 0 : i32
    %c0_i32_1 = arith.constant 0 : i32
    return %c0_i32, %c0_i32_0 : i32, i32
  }
  func.func @transform_2(%arg0: i32) -> (i32, i32) {
    %c0_i32 = arith.constant 0 : i32
    %c0_i32_0 = arith.constant 0 : i32
    %c0_i32_1 = arith.constant 0 : i32
    return %c0_i32, %c0_i32_0 : i32, i32
  }
  func.func @transform_3(%arg0: i32) -> (i32, i32, i32) {
    %c0_i32 = arith.constant 0 : i32
    %c0_i32_0 = arith.constant 0 : i32
    %c0_i32_1 = arith.constant 0 : i32
    %c0_i32_2 = arith.constant 0 : i32
    return %c0_i32, %c0_i32_0, %c0_i32_1 : i32, i32, i32
  }
  func.func @transform_4(%arg0: i32) -> (i32, i32, i32) {
    %c0_i32 = arith.constant 0 : i32
    %c0_i32_0 = arith.constant 0 : i32
    %c0_i32_1 = arith.constant 0 : i32
    %c0_i32_2 = arith.constant 0 : i32
    return %c0_i32, %c0_i32_0, %c0_i32_1 : i32, i32, i32
  }
  func.func @transform_5(%arg0: i32) -> (i32, i32, i32) {
    %c0_i32 = arith.constant 0 : i32
    %c0_i32_0 = arith.constant 0 : i32
    %c0_i32_1 = arith.constant 0 : i32
    %c0_i32_2 = arith.constant 0 : i32
    return %c0_i32, %c0_i32_0, %c0_i32_1 : i32, i32, i32
  }
  func.func @transform_6(%arg0: i32) -> (i32, i32, i32) {
    %c0_i32 = arith.constant 0 : i32
    %c0_i32_0 = arith.constant 0 : i32
    %c0_i32_1 = arith.constant 0 : i32
    %c0_i32_2 = arith.constant 0 : i32
    return %c0_i32, %c0_i32_0, %c0_i32_1 : i32, i32, i32
  }
  func.func @transform_7(%arg0: i32) -> (i32, i32, i32) {
    %c0_i32 = arith.constant 0 : i32
    %c0_i32_0 = arith.constant 0 : i32
    %c0_i32_1 = arith.constant 0 : i32
    %c0_i32_2 = arith.constant 0 : i32
    return %c0_i32, %c0_i32_0, %c0_i32_1 : i32, i32, i32
  }
  func.func @transform_8(%arg0: i32) -> (i32, i32, i32) {
    %c0_i32 = arith.constant 0 : i32
    %c0_i32_0 = arith.constant 0 : i32
    %c0_i32_1 = arith.constant 0 : i32
    %c0_i32_2 = arith.constant 0 : i32
    return %c0_i32, %c0_i32_0, %c0_i32_1 : i32, i32, i32
  }
  func.func @transform_9(%arg0: i32) -> (i32, i32, i32) {
    %c0_i32 = arith.constant 0 : i32
    %c0_i32_0 = arith.constant 0 : i32
    %c0_i32_1 = arith.constant 0 : i32
    %c0_i32_2 = arith.constant 0 : i32
    return %c0_i32, %c0_i32_0, %c0_i32_1 : i32, i32, i32
  }
  func.func @transform_10(%arg0: i32) -> (i32, i32) {
    %c0_i32 = arith.constant 0 : i32
    %c0_i32_0 = arith.constant 0 : i32
    %c0_i32_1 = arith.constant 0 : i32
    return %c0_i32, %c0_i32_0 : i32, i32
  }
  func.func @transform_11(%arg0: i32) -> (i32, i32) {
    %c0_i32 = arith.constant 0 : i32
    %c0_i32_0 = arith.constant 0 : i32
    %c0_i32_1 = arith.constant 0 : i32
    return %c0_i32, %c0_i32_0 : i32, i32
  }
  func.func @transform_12(%arg0: i32) -> (i32, i32) {
    %c0_i32 = arith.constant 0 : i32
    %c0_i32_0 = arith.constant 0 : i32
    %c0_i32_1 = arith.constant 0 : i32
    return %c0_i32, %c0_i32_0 : i32, i32
  }
}

</mosaic_0001>

<bundles_post_ra>
// kernel: tpu_custom_call.1
= control target key start
LH: loop header
LB: loop body
LE: loop exit
PB: predicated region body
PF: predicated region fallthrough
CT: control target
= control target key end

     0   :  { %vm55_vm0 = vcmask 261120   ;;  %s4943_s0 = inlined_call_operand.vmem [shape: f32[16,32], index: 0, kind: input, shape index: {}]   ;;  %s4944_s1 = inlined_call_operand.vmem [shape: f32[8,32], index: 1, kind: input, shape index: {}]   ;;  %s4945_s2 = inlined_call_operand.vmem [shape: s32[2,1], index: 2, kind: input, shape index: {}]   ;;  %s4946_s3 = inlined_call_operand.vmem [shape: bf16[2,32,96], index: 3, kind: input, shape index: {}]   ;;  %s4947_s4 = inlined_call_operand.vmem [shape: bf16[2,32,32], index: 4, kind: input, shape index: {}]   ;;  %s4948_s5 = inlined_call_operand.vmem [shape: bf16[2,32,128], index: 5, kind: input, shape index: {}]   ;;  %s4949_s6 = inlined_call_operand.vmem [shape: bf16[2,128,32], index: 6, kind: input, shape index: {}]   ;;  %s4950_s7 = inlined_call_operand.vmem [shape: f32[2,1,96], index: 7, kind: input, shape index: {}]   ;;  %s4951_s8 = inlined_call_operand.vmem [shape: f32[2,1,128], index: 8, kind: input, shape index: {}]   ;;  %s4952_s9 = inlined_call_operand.vmem [shape: f32[2,6,32], index: 9, kind: input, shape index: {}]   ;;  %s4953_s10 = inlined_call_operand.vmem [shape: f32[2,32], index: 10, kind: input, shape index: {}]   ;;  %s4954_s11 = inlined_call_operand.vmem [shape: bf16[32,32], index: 11, kind: input, shape index: {}]   ;;  %s4955_s12 = inlined_call_operand.hbm [shape: f32[2,32], index: 12, kind: output, shape index: {}]  }
   0x1   :  { %v43_v0 = vld [vmem:[%s4943_s0] sm:$0xff]  ;;  %v44_v2 = vld [vmem:[%s4943_s0 + $0x8] sm:$0xff] }
   0x2   :  { %v45_v1 = vld [vmem:[%s4944_s1] sm:$0xff] }
   0x3   :  { %v4186_v3 = vadd.f32 %v45_v1, %v43_v0  ;;  %v4188_v4 = vadd.f32 %v45_v1, %v44_v2 }
   0x5   :  { %v56_v5 = vsel %vm55_vm0, %v4186_v3, 0.0  ;;  %v59_v6 = vsel %vm55_vm0, %v4188_v4, 0.0 }
   0x6   :  { %57 = vadd.xlane.f32.xlu0 %v56_v5 }
   0xa   :  { %60 = vadd.xlane.f32.xlu0 %v59_v6 }
   0xb   :  { %17 = vsyncpa [#allocation3], 0  ;;  %v3947_v17 = vld [vmem:[%s4946_s3] sm:$0xff]   ;;  %v4099_v18 = vmov 0.0   ;;  %vm4100_vm1 = vmmov 0   ;;  %v3948_v19 = vld [vmem:[%s4946_s3 + $0x8] sm:$0xff]   ;;  %v48_v24 = vlaneseq }
   0xc   :  { %3545 = vmatprep.subr.bf16.mxu0 %v4099_v18  ;;  %3549 = vmatprep.mubr.msk.bf16.mxu0 %vm4100_vm1, %v4099_v18  ;;  %v4221_v29 = vld [vmem:[%s4952_s9] sm:$0x3f]  ;;  %s4101_s15 = smov 120   ;;  %s4102_s16 = smov 104   ;;  %vm180_vm2 = vcmask 64512   ;;  %vm680_vm4 = vcmask 1043456  }
   0xd   :  { %3546 = vmatpush3.bf16.msra.mxu0 %v3947_v17  ;;  %3553 = vmatprep.subr.bf16.mxu1 %v4099_v18  ;;  %v4213_v27 = vshrl.u32 %v48_v24, 7  ;;  %v3312_v42 = vld [vmem:[%s4950_s7] ss:$0 sm:$0xff]  ;;  %s4103_s17 = smov 112   ;;  %s4104_s18 = smov 96   ;;  %vm1073_vm5 = vcmask 130048  }
   0xe   :  { %3547 = vmatprep.subr.bf16.mxu0 %v4099_v18  ;;  %3555 = vmatprep.mubr.msk.bf16.mxu1 %vm4100_vm1, %v4099_v18  ;;  %s4105_s19 = smov 64   ;;  %s4106_s20 = smov 8   ;;  %vm1075_vm6 = vcmask 195584   ;;  %vm3213_vm8 = vcmask 254976  }
   0xf   :  { %v4216_v28 = vsub.s32 0, %v4213_v27  ;;  %v4226_v33 = vsub.s32 1, %v4213_v27  ;;  %s4107_s23 = smov 16   ;;  %s4108_s26 = smov 24  }
  0x11   :  { %3548 = vmatpush3.bf16.msra.mxu0 %v3948_v19  ;;  %v86_v32 = vrot.slane %v4221_v29, %v4216_v28  ;;  %v92_v37 = vrot.slane %v4221_v29, %v4226_v33 }
  0x12   :  { %3559 = vmatprep.subr.bf16.mxu0 %v4099_v18 }
  0x93   :  { %v58_v7 = vpop.xlane.xlu0 %57 }
  0x94   :  { %v63_v8 = vmul.f32 0.03125, %v58_v7 }
  0x96   :  { %v65_v9 = vsub.f32 %v4186_v3, %v63_v8 }
  0x97   :  { %v61_v10 = vpop.xlane.xlu0 %60 }
  0x98   :  { %v64_v11 = vmul.f32 0.03125, %v61_v10  ;;  %v67_v12 = vmul.f32 %v65_v9, %v65_v9 }
  0x9a   :  { %v66_v13 = vsub.f32 %v4188_v4, %v64_v11  ;;  %v69_v14 = vsel %vm55_vm0, %v67_v12, 0.0  ;;  %v4330_v11 = vand.u32 127, %v48_v24 }
  0x9b   :  { %70 = vadd.xlane.f32.xlu1 %v69_v14 }
  0x9c   :  { %v68_v15 = vmul.f32 %v66_v13, %v66_v13  ;;  %vm52_vm3 = vcmp.gt.s32.totalorder %v4330_v11, %v4213_v27 }
  0x9d   :  { %v4335_v12 = vsel %vm52_vm3, -1e+30, %v4099_v18 }
  0x9e   :  { %v72_v16 = vsel %vm55_vm0, %v68_v15, 0.0 }
  0x9f   :  { %73 = vadd.xlane.f32.xlu1 %v72_v16 }
 0x128   :  { %v71_v20 = vpop.xlane.xlu1 %70 }
 0x129   :  { %v75_v21 = vmul.f32 0.03125, %v71_v20 }
 0x12b   :  { %v77_v22 = vadd.f32 1e-05, %v75_v21 }
 0x12c   :  { %v74_v23 = vpop.xlane.xlu1 %73 }
 0x12d   :  { %3977 = vrsqrt.f32 %v77_v22  ;;  %v76_v25 = vmul.f32 0.03125, %v74_v23 }
 0x12f   :  { %v78_v26 = vadd.f32 1e-05, %v76_v25 }
 0x131   :  { %3979 = vrsqrt.f32 %v78_v26 }
 0x137   :  { %v3978_v30 = vpop.eup %3977 }
 0x138   :  { %v81_v31 = vmul.f32 %v3978_v30, %v65_v9 }
 0x13a   :  { %v87_v36 = vmul.f32 %v86_v32, %v81_v31 }
 0x13b   :  { %v3980_v34 = vpop.eup %3979 }
 0x13c   :  { %v82_v35 = vmul.f32 %v3980_v34, %v66_v13  ;;  %v93_v39 = vadd.f32 %v92_v37, %v87_v36 }
 0x13e   :  { %v88_v38 = vmul.f32 %v86_v32, %v82_v35 }
 0x140   :  { %v94_v40 = vadd.f32 %v92_v37, %v88_v38 }
 0x142   :  { %v95_v41 = vpack.c.bf16 %v94_v40, %v93_v39 }
 0x144   :  { %3550 = vmatmul.mubr.msk.bf16.vlgmr.msra.gmra.mrb[0].mxu0 %vm55_vm0, %v95_v41 }
 0x145   :  { %3561 = vmatprep.mubr.msk.bf16.mxu0 %vm4100_vm1, %v4099_v18 }
 0x217   :  { %v156_v43 = vpop.f32.mrb[0].mxu0 }
 0x218   :  { %v3551_v44 = vpop.f32.mrb[1].mxu0  ;;  %v157_v46 = vadd.f32 %v3312_v42, %v156_v43 }
 0x219   :  { %v159_v45 = vpop.f32.mrb[2].mxu0 }
 0x21a   :  { %v160_v47 = vadd.f32 %v3312_v42, %v159_v45  ;;  %v3552_v48 = vpop.f32.mrb[3].mxu0 }
 0x21c   :  { %v4236_v49 = vpack.c.bf16 %v160_v47, %v157_v46 }
 0x21e   :  { %166 = vrot.lane.b32.xlu0 %v4236_v49, %s4101_s15  ;;  %v4241_v50 = vrot.slane %v4236_v49, 4 }
 0x220   :  { %168 = vrot.lane.b32.xlu1 %v4241_v50, %s4101_s15 }
 0x222   :  { %174 = vrot.lane.b32.xlu0 %v4236_v49, %s4102_s16 }
 0x224   :  { %170 = vrot.lane.b32.xlu1 %v4236_v49, %s4103_s17 }
 0x226   :  { %178 = vrot.lane.b32.xlu0 %v4236_v49, %s4104_s18 }
 0x228   :  { %172 = vrot.lane.b32.xlu1 %v4241_v50, %s4103_s17 }
 0x22c   :  { %176 = vrot.lane.b32.xlu1 %v4241_v50, %s4102_s16 }
 0x230   :  { %227 = vrot.lane.b32.xlu1 %v4241_v50, %s4104_s18 }
 0x290   :  { %v4257_v51 = vpop.permute.xlu0 %166 }
 0x291   :  { %275 = vrot.lane.b32.xlu0 %v4257_v51, %s4104_s18 }
 0x292   :  { %v4261_v52 = vpop.permute.xlu1 %168 }
 0x293   :  { %323 = vrot.lane.b32.xlu1 %v4261_v52, %s4104_s18 }
 0x294   :  { %v4265_v53 = vpop.permute.xlu0 %174 }
 0x296   :  { %v4267_v54 = vpop.permute.xlu1 %170 }
 0x297   :  { %371 = vrot.lane.b32.xlu0 %v4267_v54, %s4104_s18 }
 0x298   :  { %v179_v55 = vpop.permute.xlu0 %178 }
 0x299   :  { %v185_v56 = vsel %vm180_vm2, %v179_v55, 0 }
 0x29a   :  { %3554 = vmatpush3.bf16.xpose.msra.mxu1 %v185_v56  ;;  %v4272_v57 = vpop.permute.xlu1 %172 }
 0x29b   :  { %467 = vrot.lane.b32.xlu0 %v4265_v53, %s4104_s18  ;;  %419 = vrot.lane.b32.xlu1 %v4272_v57, %s4104_s18 }
 0x29c   :  { %3565 = vmatprep.subr.bf16.mxu1 %v4099_v18 }
 0x29e   :  { %v4279_v58 = vpop.permute.xlu1 %176 }
 0x29f   :  { %515 = vrot.lane.b32.xlu1 %v4279_v58, %s4104_s18 }
 0x2a1   :  { %3556 = vmatmul.mubr.msk.bf16.vlgmr.msra.gmra.mrb[0].mxu1 %vm180_vm2, %v4236_v49 }
 0x2a2   :  { %v228_v59 = vpop.permute.xlu1 %227  ;;  %3567 = vmatprep.mubr.msk.bf16.mxu1 %vm4100_vm1, %v4099_v18 }
 0x2a3   :  { %v233_v60 = vsel %vm180_vm2, %v228_v59, 0 }
 0x2a4   :  { %3560 = vmatpush3.bf16.xpose.msra.mxu0 %v233_v60 }
 0x2a5   :  { %3571 = vmatprep.subr.bf16.mxu0 %v4099_v18 }
 0x2ab   :  { %3562 = vmatmul.mubr.msk.bf16.vlgmr.msra.gmra.mrb[4].mxu0 %vm180_vm2, %v4241_v50 }
 0x2ac   :  { %3573 = vmatprep.mubr.msk.bf16.mxu0 %vm4100_vm1, %v4099_v18 }
 0x303   :  { %v276_v61 = vpop.permute.xlu0 %275 }
 0x304   :  { %v281_v62 = vsel %vm180_vm2, %v276_v61, 0 }
 0x305   :  { %3566 = vmatpush3.bf16.xpose.msra.mxu1 %v281_v62  ;;  %v324_v63 = vpop.permute.xlu1 %323 }
 0x306   :  { %v329_v0 = vsel %vm180_vm2, %v324_v63, 0  ;;  %3577 = vmatprep.subr.bf16.mxu1 %v4099_v18 }
 0x307   :  { %3572 = vmatpush3.bf16.xpose.msra.mxu0 %v329_v0 }
 0x308   :  { %3583 = vmatprep.subr.bf16.mxu0 %v4099_v18 }
 0x309   :  { %v372_v1 = vpop.permute.xlu0 %371 }
 0x30a   :  { %v377_v2 = vsel %vm180_vm2, %v372_v1, 0 }
 0x30c   :  { %3568 = vmatmul.mubr.msk.bf16.vlgmr.msra.gmra.mrb[4].mxu1 %vm180_vm2, %v4257_v51 }
 0x30d   :  { %3578 = vmatpush3.bf16.xpose.msra.mxu1 %v377_v2  ;;  %v420_v5 = vpop.permute.xlu1 %419  ;;  %3579 = vmatprep.mubr.msk.bf16.mxu1 %vm4100_vm1, %v4099_v18  ;;  %v468_v7 = vpop.permute.xlu0 %467 }
 0x30e   :  { %v425_v6 = vsel %vm180_vm2, %v420_v5, 0  ;;  %3574 = vmatmul.mubr.msk.bf16.vlgmr.msra.gmra.mrb[8].mxu0 %vm180_vm2, %v4261_v52  ;;  %3589 = vmatprep.subr.bf16.mxu1 %v4099_v18  ;;  %v473_v9 = vsel %vm180_vm2, %v468_v7, 0 }
 0x30f   :  { %3584 = vmatpush3.bf16.xpose.msra.mxu0 %v425_v6  ;;  %3585 = vmatprep.mubr.msk.bf16.mxu0 %vm4100_vm1, %v4099_v18 }
 0x310   :  { %3595 = vmatprep.subr.bf16.mxu0 %v4099_v18 }
 0x311   :  { %v516_v8 = vpop.permute.xlu1 %515 }
 0x312   :  { %v521_v10 = vsel %vm180_vm2, %v516_v8, 0 }
 0x314   :  { %3580 = vmatmul.mubr.msk.bf16.vlgmr.msra.gmra.mrb[8].mxu1 %vm180_vm2, %v4267_v54 }
 0x315   :  { %3590 = vmatpush3.bf16.xpose.msra.mxu1 %v473_v9  ;;  %3591 = vmatprep.mubr.msk.bf16.mxu1 %vm4100_vm1, %v4099_v18 }
 0x316   :  { %3586 = vmatmul.mubr.msk.bf16.vlgmr.msra.gmra.mrb[12].mxu0 %vm180_vm2, %v4272_v57  ;;  %3601 = vmatprep.subr.bf16.mxu1 %v4099_v18 }
 0x317   :  { %3596 = vmatpush3.bf16.xpose.msra.mxu0 %v521_v10  ;;  %3597 = vmatprep.mubr.msk.bf16.mxu0 %vm4100_vm1, %v4099_v18 }
 0x318   :  { %3607 = vmatprep.subr.bf16.mxu0 %v4099_v18 }
 0x31c   :  { %3592 = vmatmul.mubr.msk.bf16.vlgmr.msra.gmra.mrb[12].mxu1 %vm180_vm2, %v4265_v53 }
 0x31d   :  { %3603 = vmatprep.mubr.msk.bf16.mxu1 %vm4100_vm1, %v4099_v18 }
 0x31e   :  { %3598 = vmatmul.mubr.msk.bf16.vlgmr.msra.gmra.mrb[16].mxu0 %vm180_vm2, %v4279_v58 }
 0x31f   :  { %3609 = vmatprep.mubr.msk.bf16.mxu0 %vm4100_vm1, %v4099_v18 }
 0x374   :  { %v221_v13 = vpop.f32.mrb[0].mxu1 }
 0x375   :  { %v563_v14 = vmul.f32 0.35355338, %v221_v13  ;;  %v3557_v15 = vpop.f32.mrb[1].mxu1 }
 0x376   :  { %v224_v16 = vpop.f32.mrb[2].mxu1 }
 0x377   :  { %v3558_v17 = vpop.f32.mrb[3].mxu1  ;;  %v571_v19 = vadd.f32 %v563_v14, %v4335_v12 }
 0x379   :  { %v579_v20 = vsel %vm180_vm2, %v571_v19, -inf }
 0x37a   :  { %580 = vmax.xlane.f32.xlu0 %v579_v20 }
 0x37e   :  { %v269_v21 = vpop.f32.mrb[4].mxu0 }
 0x37f   :  { %v564_v22 = vmul.f32 0.35355338, %v269_v21  ;;  %v3563_v23 = vpop.f32.mrb[5].mxu0 }
 0x380   :  { %v272_v24 = vpop.f32.mrb[6].mxu0 }
 0x381   :  { %v3564_v25 = vpop.f32.mrb[7].mxu0  ;;  %v4340_v26 = vadd.f32 %v564_v22, %v4335_v12 }
 0x383   :  { %v582_v30 = vsel %vm180_vm2, %v4340_v26, -inf }
 0x384   :  { %583 = vmax.xlane.f32.xlu1 %v582_v30 }
 0x3df   :  { %v317_v31 = vpop.f32.mrb[4].mxu1 }
 0x3e0   :  { %v565_v32 = vmul.f32 0.35355338, %v317_v31  ;;  %v3569_v34 = vpop.f32.mrb[5].mxu1 }
 0x3e1   :  { %v320_v35 = vpop.f32.mrb[6].mxu1  ;;  %v365_v36 = vpop.f32.mrb[8].mxu0 }
 0x3e2   :  { %v566_v37 = vmul.f32 0.35355338, %v365_v36  ;;  %v3570_v38 = vpop.f32.mrb[7].mxu1  ;;  %v3575_v39 = vpop.f32.mrb[9].mxu0  ;;  %v573_v40 = vadd.f32 %v565_v32, %v4335_v12 }
 0x3e3   :  { %v368_v41 = vpop.f32.mrb[10].mxu0 }
 0x3e4   :  { %v3576_v42 = vpop.f32.mrb[11].mxu0  ;;  %v585_v43 = vsel %vm180_vm2, %v573_v40, -inf  ;;  %v4347_v44 = vadd.f32 %v566_v37, %v4335_v12 }
 0x3e5   :  { %586 = vmax.xlane.f32.xlu0 %v585_v43 }
 0x3e6   :  { %v588_v48 = vsel %vm180_vm2, %v4347_v44, -inf }
 0x3e7   :  { %v413_v45 = vpop.f32.mrb[8].mxu1 }
 0x3e8   :  { %v567_v46 = vmul.f32 0.35355338, %v413_v45  ;;  %v3581_v47 = vpop.f32.mrb[9].mxu1 }
 0x3e9   :  { %v416_v55 = vpop.f32.mrb[10].mxu1  ;;  %589 = vmax.xlane.f32.xlu0 %v588_v48  ;;  %v461_v56 = vpop.f32.mrb[12].mxu0 }
 0x3ea   :  { %v568_v59 = vmul.f32 0.35355338, %v461_v56  ;;  %v3582_v60 = vpop.f32.mrb[11].mxu1  ;;  %v3587_v61 = vpop.f32.mrb[13].mxu0  ;;  %v4352_v62 = vadd.f32 %v567_v46, %v4335_v12 }
 0x3eb   :  { %v464_v63 = vpop.f32.mrb[14].mxu0 }
 0x3ec   :  { %v3588_v0 = vpop.f32.mrb[15].mxu0  ;;  %v591_v1 = vsel %vm180_vm2, %v4352_v62, -inf  ;;  %v576_v2 = vadd.f32 %v568_v59, %v4335_v12 }
 0x3ed   :  { %592 = vmax.xlane.f32.xlu0 %v591_v1 }
 0x3ee   :  { %v594_v5 = vsel %vm180_vm2, %v576_v2, -inf }
 0x3ef   :  { %v509_v6 = vpop.f32.mrb[12].mxu1  ;;  %595 = vmax.xlane.f32.xlu1 %v594_v5 }
 0x3f0   :  { %v569_v7 = vmul.f32 0.35355338, %v509_v6  ;;  %v3593_v8 = vpop.f32.mrb[13].mxu1 }
 0x3f1   :  { %v512_v9 = vpop.f32.mrb[14].mxu1  ;;  %v557_v10 = vpop.f32.mrb[16].mxu0 }
 0x3f2   :  { %v3594_v13 = vpop.f32.mrb[15].mxu1  ;;  %v3599_v14 = vpop.f32.mrb[17].mxu0  ;;  %v4359_v15 = vadd.f32 %v569_v7, %v4335_v12  ;;  %v570_v24 = vmul.f32 0.35355338, %v557_v10 }
 0x3f3   :  { %v560_v16 = vpop.f32.mrb[18].mxu0 }
 0x3f4   :  { %v3600_v17 = vpop.f32.mrb[19].mxu0  ;;  %v597_v20 = vsel %vm180_vm2, %v4359_v15, -inf  ;;  %v578_v25 = vadd.f32 %v570_v24, %v4335_v12 }
 0x3f5   :  { %598 = vmax.xlane.f32.xlu0 %v597_v20 }
 0x3f6   :  { %v600_v31 = vsel %vm180_vm2, %v578_v25, -inf }
 0x400   :  { %724 = vrot.lane.b32.xlu1 %v4241_v50, %s4105_s19 }
 0x404   :  { %772 = vrot.lane.b32.xlu1 %v4257_v51, %s4105_s19 }
 0x407   :  { %v581_v21 = vpop.xlane.xlu0 %580 }
 0x408   :  { %v603_v22 = vsub.f32 %v571_v19, %v581_v21 }
 0x40a   :  { %v611_v23 = vmul.f32 1.442695, %v603_v22 }
 0x40b   :  { %675 = vrot.lane.b32.xlu0 %v4236_v49, %s4105_s19 }
 0x40c   :  { %3981 = vpow2.f32 %v611_v23 }
 0x411   :  { %v584_v49 = vpop.xlane.xlu1 %583 }
 0x412   :  { %v604_v51 = vsub.f32 %v4340_v26, %v584_v49 }
 0x414   :  { %v613_v19 = vmul.f32 1.442695, %v604_v51 }
 0x416   :  { %v4370_v30 = vpop.eup %3981  ;;  %3983 = vpow2.f32 %v613_v19 }
 0x417   :  { %v627_v50 = vsel %vm180_vm2, %v4370_v30, 0.0 }
 0x420   :  { %v4378_v32 = vpop.eup %3983 }
 0x421   :  { %v630_v34 = vsel %vm180_vm2, %v4378_v32, 0.0 }
 0x428   :  { %601 = vmax.xlane.f32.xlu1 %v600_v31 }
 0x42a   :  { %628 = vadd.xlane.f32.xlu0 %v627_v50 }
 0x439   :  { %820 = vrot.lane.b32.xlu1 %v4261_v52, %s4105_s19 }
 0x45d   :  { %631 = vadd.xlane.f32.xlu1 %v630_v34 }
 0x46e   :  { %916 = vrot.lane.b32.xlu1 %v4272_v57, %s4105_s19 }
 0x472   :  { %v587_v35 = vpop.xlane.xlu0 %586 }
 0x473   :  { %v605_v36 = vsub.f32 %v573_v40, %v587_v35 }
 0x475   :  { %v615_v37 = vmul.f32 1.442695, %v605_v36 }
 0x476   :  { %v590_v38 = vpop.xlane.xlu0 %589 }
 0x477   :  { %3985 = vpow2.f32 %v615_v37  ;;  %v606_v52 = vsub.f32 %v4347_v44, %v590_v38 }
 0x479   :  { %v617_v41 = vmul.f32 1.442695, %v606_v52 }
 0x47a   :  { %v593_v26 = vpop.xlane.xlu0 %592 }
 0x47b   :  { %3987 = vpow2.f32 %v617_v41  ;;  %v607_v61 = vsub.f32 %v4352_v62, %v593_v26 }
 0x47c   :  { %v596_v39 = vpop.xlane.xlu1 %595 }
 0x47d   :  { %v608_v42 = vsub.f32 %v576_v2, %v596_v39  ;;  %v619_v63 = vmul.f32 1.442695, %v607_v61 }
 0x47f   :  { %v621_v40 = vmul.f32 1.442695, %v608_v42 }
 0x480   :  { %v725_v43 = vpop.permute.xlu1 %724 }
 0x481   :  { %v4385_v45 = vpop.eup %3985  ;;  %v730_v46 = vsel %vm680_vm4, %v725_v43, 0  ;;  %3989 = vpow2.f32 %v621_v40 }
 0x482   :  { %v599_v47 = vpop.xlane.xlu0 %598  ;;  %3608 = vmatpush3.bf16.msra.mxu0 %v730_v46  ;;  %v633_v57 = vsel %vm180_vm2, %v4385_v45, 0.0  ;;  %3991 = vpow2.f32 %v619_v63 }
 0x483   :  { %634 = vadd.xlane.f32.xlu0 %v633_v57  ;;  %3619 = vmatprep.subr.bf16.mxu0 %v4099_v18  ;;  %v609_v0 = vsub.f32 %v4359_v15, %v599_v47 }
 0x484   :  { %v773_v2 = vpop.permute.xlu1 %772 }
 0x485   :  { %v4393_v55 = vpop.eup %3987  ;;  %v623_v1 = vmul.f32 1.442695, %v609_v0  ;;  %v778_v20 = vsel %vm680_vm4, %v773_v2, 0 }
 0x486   :  { %v676_v44 = vpop.permute.xlu0 %675  ;;  %v636_v56 = vsel %vm180_vm2, %v4393_v55, 0.0 }
 0x487   :  { %v682_v48 = vsel %vm680_vm4, %v676_v44, 0  ;;  %3993 = vpow2.f32 %v623_v1 }
 0x488   :  { %3602 = vmatpush3.bf16.msra.mxu1 %v682_v48 }
 0x489   :  { %3613 = vmatprep.subr.bf16.mxu1 %v4099_v18 }
 0x48b   :  { %v4397_v59 = vpop.eup %3989 }
 0x48c   :  { %v642_v60 = vsel %vm180_vm2, %v4397_v59, 0.0  ;;  %v4405_v5 = vpop.eup %3991 }
 0x48d   :  { %v639_v9 = vsel %vm180_vm2, %v4405_v5, 0.0 }
 0x491   :  { %v4409_v10 = vpop.eup %3993 }
 0x492   :  { %637 = vadd.xlane.f32.xlu1 %v636_v56  ;;  %v645_v62 = vsel %vm180_vm2, %v4409_v10, 0.0 }
 0x496   :  { %643 = vadd.xlane.f32.xlu1 %v642_v60 }
 0x499   :  { %868 = vrot.lane.b32.xlu0 %v4267_v54, %s4105_s19 }
 0x4b5   :  { %v602_v6 = vpop.xlane.xlu1 %601 }
 0x4b6   :  { %v610_v7 = vsub.f32 %v578_v25, %v602_v6 }
 0x4b7   :  { %v629_v8 = vpop.xlane.xlu0 %628 }
 0x4b8   :  { %v625_v54 = vmul.f32 1.442695, %v610_v7  ;;  %3995 = vrcp.f32 %v629_v8  ;;  %640 = vadd.xlane.f32.xlu0 %v639_v9 }
 0x4b9   :  { %v821_v21 = vpop.permute.xlu1 %820 }
 0x4ba   :  { %3997 = vpow2.f32 %v625_v54 }
 0x4bc   :  { %646 = vadd.xlane.f32.xlu0 %v645_v62 }
 0x4c2   :  { %v3996_v13 = vpop.eup %3995 }
 0x4c3   :  { %v652_v14 = vmul.f32 %v3996_v13, %v4370_v30  ;;  %v826_v30 = vsel %vm680_vm4, %v821_v21, 0 }
 0x4c4   :  { %v4414_v15 = vpop.eup %3997 }
 0x4c5   :  { %v648_v16 = vsel %vm180_vm2, %v4414_v15, 0.0  ;;  %v667_v17 = vpack.c.bf16 %v652_v14, %v652_v14 }
 0x4c6   :  { %649 = vadd.xlane.f32.xlu1 %v648_v16 }
 0x4c7   :  { %3604 = vmatmul.mubr.msk.bf16.vlgmr.msra.gmra.mrb[16].mxu1 %vm180_vm2, %v667_v17 }
 0x4c8   :  { %3614 = vmatpush3.bf16.msra.mxu1 %v778_v20  ;;  %3615 = vmatprep.mubr.msk.bf16.mxu1 %vm4100_vm1, %v4099_v18 }
 0x4c9   :  { %3625 = vmatprep.subr.bf16.mxu1 %v4099_v18 }
 0x4d2   :  { %964 = vrot.lane.b32.xlu0 %v4265_v53, %s4105_s19 }
 0x4d7   :  { %1012 = vrot.lane.b32.xlu1 %v4279_v58, %s4105_s19 }
 0x4ea   :  { %v632_v22 = vpop.xlane.xlu1 %631 }
 0x4eb   :  { %3999 = vrcp.f32 %v632_v22 }
 0x4ee   :  { %v917_v31 = vpop.permute.xlu1 %916 }
 0x4ef   :  { %v922_v52 = vsel %vm680_vm4, %v917_v31, 0 }
 0x4f5   :  { %v4000_v23 = vpop.eup %3999 }
 0x4f6   :  { %v654_v24 = vmul.f32 %v4000_v23, %v4378_v32 }
 0x4f8   :  { %v668_v25 = vpack.c.bf16 %v654_v24, %v654_v24 }
 0x4fa   :  { %3610 = vmatmul.mubr.msk.bf16.vlgmr.msra.gmra.mrb[20].mxu0 %vm180_vm2, %v668_v25  ;;  %v3949_v25 = vld [vmem:[%s4947_s4] sm:$0xff]  }
 0x4fb   :  { %3620 = vmatpush3.bf16.msra.mxu0 %v826_v30  ;;  %3621 = vmatprep.mubr.msk.bf16.mxu0 %vm4100_vm1, %v4099_v18 }
 0x4fc   :  { %3631 = vmatprep.subr.bf16.mxu0 %v4099_v18 }
 0x510   :  { %v635_v53 = vpop.xlane.xlu0 %634 }
 0x511   :  { %4001 = vrcp.f32 %v635_v53 }
 0x514   :  { %v869_v49 = vpop.permute.xlu0 %868 }
 0x515   :  { %v874_v32 = vsel %vm680_vm4, %v869_v49, 0  ;;  %v3950_v49 = vld [vmem:[%s4947_s4 + $0x8] sm:$0xff]  }
 0x51b   :  { %v4002_v58 = vpop.eup %4001 }
 0x51c   :  { %v656_v50 = vmul.f32 %v4002_v58, %v4385_v45 }
 0x51e   :  { %v669_v51 = vpack.c.bf16 %v656_v50, %v656_v50 }
 0x51f   :  { %v638_v19 = vpop.xlane.xlu1 %637 }
 0x520   :  { %4003 = vrcp.f32 %v638_v19  ;;  %3616 = vmatmul.mubr.msk.bf16.vlgmr.msra.gmra.mrb[20].mxu1 %vm180_vm2, %v669_v51 }
 0x521   :  { %3626 = vmatpush3.bf16.msra.mxu1 %v874_v32  ;;  %3627 = vmatprep.mubr.msk.bf16.mxu1 %vm4100_vm1, %v4099_v18 }
 0x522   :  { %3637 = vmatprep.subr.bf16.mxu1 %v4099_v18 }
 0x523   :  { %v644_v34 = vpop.xlane.xlu1 %643 }
 0x524   :  { %4005 = vrcp.f32 %v644_v34 }
 0x52a   :  { %v4004_v35 = vpop.eup %4003 }
 0x52b   :  { %v658_v36 = vmul.f32 %v4004_v35, %v4393_v55 }
 0x52d   :  { %v670_v37 = vpack.c.bf16 %v658_v36, %v658_v36 }
 0x52e   :  { %v4006_v38 = vpop.eup %4005 }
 0x52f   :  { %3622 = vmatmul.mubr.msk.bf16.vlgmr.msra.gmra.mrb[24].mxu0 %vm180_vm2, %v670_v37  ;;  %v662_v39 = vmul.f32 %v4006_v38, %v4397_v59 }
 0x530   :  { %3632 = vmatpush3.bf16.msra.mxu0 %v922_v52  ;;  %3633 = vmatprep.mubr.msk.bf16.mxu0 %vm4100_vm1, %v4099_v18 }
 0x531   :  { %3643 = vmatprep.subr.bf16.mxu0 %v4099_v18  ;;  %v672_v26 = vpack.c.bf16 %v662_v39, %v662_v39 }
 0x537   :  { %3634 = vmatmul.mubr.msk.bf16.vlgmr.msra.gmra.mrb[28].mxu0 %vm180_vm2, %v672_v26 }
 0x538   :  { %3645 = vmatprep.mubr.msk.bf16.mxu0 %vm4100_vm1, %v4099_v18 }
 0x545   :  { %v641_v41 = vpop.xlane.xlu0 %640 }
 0x546   :  { %4007 = vrcp.f32 %v641_v41 }
 0x549   :  { %v647_v42 = vpop.xlane.xlu0 %646 }
 0x54a   :  { %4009 = vrcp.f32 %v647_v42 }
 0x54d   :  { %v965_v46 = vpop.permute.xlu0 %964 }
 0x54e   :  { %v970_v44 = vsel %vm680_vm4, %v965_v46, 0 }
 0x550   :  { %v4008_v43 = vpop.eup %4007 }
 0x551   :  { %v660_v45 = vmul.f32 %v4008_v43, %v4405_v5 }
 0x553   :  { %v650_v47 = vpop.xlane.xlu1 %649  ;;  %v671_v57 = vpack.c.bf16 %v660_v45, %v660_v45 }
 0x554   :  { %v4010_v40 = vpop.eup %4009  ;;  %4011 = vrcp.f32 %v650_v47 }
 0x555   :  { %3628 = vmatmul.mubr.msk.bf16.vlgmr.msra.gmra.mrb[24].mxu1 %vm180_vm2, %v671_v57  ;;  %v664_v48 = vmul.f32 %v4010_v40, %v4409_v10 }
 0x556   :  { %3638 = vmatpush3.bf16.msra.mxu1 %v970_v44  ;;  %3639 = vmatprep.mubr.msk.bf16.mxu1 %vm4100_vm1, %v4099_v18 }
 0x557   :  { %v1013_v55 = vpop.permute.xlu1 %1012  ;;  %3649 = vmatprep.subr.bf16.mxu1 %v4099_v18  ;;  %v673_v59 = vpack.c.bf16 %v664_v48, %v664_v48 }
 0x558   :  { %v1018_v56 = vsel %vm680_vm4, %v1013_v55, 0 }
 0x559   :  { %3644 = vmatpush3.bf16.msra.mxu0 %v1018_v56 }
 0x55a   :  { %3657 = vmatprep.subr.bf16.mxu0 %v4099_v18 }
 0x55d   :  { %3640 = vmatmul.mubr.msk.bf16.vlgmr.msra.gmra.mrb[28].mxu1 %vm180_vm2, %v673_v59 }
 0x55e   :  { %v4012_v60 = vpop.eup %4011  ;;  %3653 = vmatprep.mubr.msk.bf16.mxu1 %vm4100_vm1, %v4099_v18  ;;  %3650 = vmatpush3.bf16.msra.mxu1 %v3949_v25 }
 0x55f   :  { %v666_v61 = vmul.f32 %v4012_v60, %v4414_v15  ;;  %3651 = vmatprep.subr.bf16.mxu1 %v4099_v18 }
 0x561   :  { %v674_v63 = vpack.c.bf16 %v666_v61, %v666_v61  ;;  %v1157_v61 = vsub.s32 4, %v4213_v27 }
 0x562   :  { %3652 = vmatpush3.bf16.msra.mxu1 %v3950_v49 }
 0x563   :  { %3646 = vmatmul.mubr.msk.bf16.vlgmr.msra.gmra.mrb[32].mxu0 %vm180_vm2, %v674_v63  ;;  %3665 = vmatprep.subr.bf16.mxu1 %v4099_v18  ;;  %v1158_v63 = vrot.slane %v4221_v29, %v1157_v61 }
 0x564   :  { %3661 = vmatprep.mubr.msk.bf16.mxu0 %vm4100_vm1, %v4099_v18 }
 0x59a   :  { %v718_v0 = vpop.f32.mrb[16].mxu1 }
 0x59b   :  { %v3605_v1 = vpop.f32.mrb[17].mxu1 }
 0x59c   :  { %v721_v2 = vpop.f32.mrb[18].mxu1 }
 0x59d   :  { %v3606_v5 = vpop.f32.mrb[19].mxu1 }
 0x5cd   :  { %v766_v6 = vpop.f32.mrb[20].mxu0 }
 0x5ce   :  { %v3611_v7 = vpop.f32.mrb[21].mxu0 }
 0x5cf   :  { %v769_v8 = vpop.f32.mrb[22].mxu0 }
 0x5d0   :  { %v3612_v9 = vpop.f32.mrb[23].mxu0 }
 0x5f3   :  { %v814_v10 = vpop.f32.mrb[20].mxu1 }
 0x5f4   :  { %v3617_v54 = vpop.f32.mrb[21].mxu1 }
 0x5f5   :  { %v817_v62 = vpop.f32.mrb[22].mxu1 }
 0x5f6   :  { %v3618_v13 = vpop.f32.mrb[23].mxu1 }
 0x602   :  { %v862_v14 = vpop.f32.mrb[24].mxu0 }
 0x603   :  { %v3916_v15 = vpack.i.bf16 %v862_v14, %v814_v10  ;;  %v3623_v16 = vpop.f32.mrb[25].mxu0 }
 0x604   :  { %v865_v17 = vpop.f32.mrb[26].mxu0 }
 0x605   :  { %3917 = vrot.lane.b32.xlu0 %v3916_v15, %s4106_s20  ;;  %v3624_v20 = vpop.f32.mrb[27].mxu0 }
 0x60a   :  { %v958_v21 = vpop.f32.mrb[28].mxu0 }
 0x60b   :  { %v3635_v22 = vpop.f32.mrb[29].mxu0 }
 0x60c   :  { %v961_v23 = vpop.f32.mrb[30].mxu0  ;;  %v3951_v22 = vld [vmem:[%s4948_s5] sm:$0xff]  }
 0x60d   :  { %v3636_v24 = vpop.f32.mrb[31].mxu0  ;;  %3658 = vmatpush3.bf16.msra.mxu0 %v3951_v22  ;;  %v3952_v23 = vld [vmem:[%s4948_s5 + $0x8] sm:$0xff]  }
 0x60e   :  { %3659 = vmatprep.subr.bf16.mxu0 %v4099_v18 }
 0x611   :  { %3660 = vmatpush3.bf16.msra.mxu0 %v3952_v23 }
 0x612   :  { %3685 = vmatprep.subr.bf16.mxu0 %v4099_v18 }
 0x628   :  { %v910_v30 = vpop.f32.mrb[24].mxu1 }
 0x629   :  { %v3921_v53 = vpack.i.bf16 %v958_v21, %v910_v30  ;;  %v3629_v58 = vpop.f32.mrb[25].mxu1 }
 0x62a   :  { %v913_v31 = vpop.f32.mrb[26].mxu1 }
 0x62b   :  { %v3630_v50 = vpop.f32.mrb[27].mxu1  ;;  %3922 = vrot.lane.b32.xlu1 %v3921_v53, %s4107_s23 }
 0x62c   :  { %v1189_v50 = vsub.s32 2, %v4213_v27 }
 0x630   :  { %v1006_v51 = vpop.f32.mrb[28].mxu1 }
 0x631   :  { %v3641_v19 = vpop.f32.mrb[29].mxu1 }
 0x632   :  { %v1009_v32 = vpop.f32.mrb[30].mxu1 }
 0x633   :  { %v3642_v34 = vpop.f32.mrb[31].mxu1  ;;  %v1195_v32 = vsub.s32 3, %v4213_v27 }
 0x636   :  { %v1054_v35 = vpop.f32.mrb[32].mxu0 }
 0x637   :  { %v3926_v36 = vpack.i.bf16 %v1054_v35, %v1006_v51  ;;  %v3647_v37 = vpop.f32.mrb[33].mxu0  ;;  %v1190_v51 = vrot.slane %v4221_v29, %v1189_v50 }
 0x638   :  { %v1057_v38 = vpop.f32.mrb[34].mxu0  ;;  %v1196_v37 = vrot.slane %v4221_v29, %v1195_v32 }
 0x639   :  { %3927 = vrot.lane.b32.xlu0 %v3926_v36, %s4108_s26  ;;  %v3648_v52 = vpop.f32.mrb[35].mxu0 }
 0x677   :  { %v3918_v39 = vpop.permute.xlu0 %3917 }
 0x678   :  { %v3920_v41 = vunpack.i.h.bf16 %v3918_v39  ;;  %v3919_v42 = vunpack.i.l.bf16 %v3918_v39 }
 0x67a   :  { %v1089_v47 = vsel %vm180_vm2, %v766_v6, %v3920_v41  ;;  %v1072_v57 = vsel %vm180_vm2, %v718_v0, %v3919_v42  ;;  %v3953_v41 = vld [vmem:[%s4949_s6] sm:$0xff]   ;;  %v3954_v42 = vld [vmem:[%s4949_s6 + $0x8] sm:$0xff]  }
 0x69d   :  { %v3923_v26 = vpop.permute.xlu1 %3922 }
 0x69e   :  { %v3925_v43 = vunpack.i.h.bf16 %v3923_v26  ;;  %v3924_v45 = vunpack.i.l.bf16 %v3923_v26 }
 0x6a0   :  { %v1090_v48 = vsel %vm1073_vm5, %v1089_v47, %v3925_v43  ;;  %v1074_v55 = vsel %vm1073_vm5, %v1072_v57, %v3924_v45  ;;  %v3955_v43 = vld [vmem:[%s4949_s6 + $0x10] sm:$0xff]   ;;  %v3956_v45 = vld [vmem:[%s4949_s6 + $0x18] sm:$0xff]   ;;  %v3958_v47 = vld [vmem:[%s4949_s6 + $0x28] sm:$0xff]  }
 0x6a1   :  { %v3959_v57 = vld [vmem:[%s4949_s6 + $0x30] sm:$0xff]  }
 0x6ab   :  { %v3928_v46 = vpop.permute.xlu0 %3927 }
 0x6ac   :  { %v3930_v40 = vunpack.i.h.bf16 %v3928_v46  ;;  %v3929_v44 = vunpack.i.l.bf16 %v3928_v46  ;;  %v3957_v46 = vld [vmem:[%s4949_s6 + $0x20] sm:$0xff]  }
 0x6ae   :  { %v1091_v56 = vsel %vm1075_vm6, %v1090_v48, %v3930_v40  ;;  %v1076_v59 = vsel %vm1075_vm6, %v1074_v55, %v3929_v44  ;;  %v3960_v40 = vld [vmem:[%s4949_s6 + $0x38] sm:$0xff]   ;;  %v3335_v44 = vld [vmem:[%s4951_s8] ss:$0 sm:$0xff] }
 0x6af   :  { %v1092_v60 = vpack.c.bf16 %v1091_v56, %v1076_v59 }
 0x6b1   :  { %3654 = vmatmul.mubr.msk.bf16.vlgmr.msra.gmra.mrb[32].mxu1 %vm55_vm0, %v1092_v60 }
 0x6b2   :  { %3681 = vmatprep.mubr.msk.bf16.mxu1 %vm4100_vm1, %v4099_v18  ;;  %3666 = vmatpush3.bf16.msra.mxu1 %v3953_v41 }
 0x6b3   :  { %3667 = vmatprep.subr.bf16.mxu1 %v4099_v18 }
 0x6b6   :  { %3668 = vmatpush3.bf16.msra.mxu1 %v3954_v42 }
 0x6b7   :  { %3669 = vmatprep.subr.bf16.mxu1 %v4099_v18 }
 0x6ba   :  { %3670 = vmatpush3.bf16.msra.mxu1 %v3955_v43 }
 0x6bb   :  { %3671 = vmatprep.subr.bf16.mxu1 %v4099_v18 }
 0x6be   :  { %3672 = vmatpush3.bf16.msra.mxu1 %v3956_v45  ;;  %v4588_v45 = vld [vmem:[%s4952_s9 + $0x8] sm:$0x3f] }
 0x6bf   :  { %3673 = vmatprep.subr.bf16.mxu1 %v4099_v18 }
 0x6c2   :  { %3674 = vmatpush3.bf16.msra.mxu1 %v3957_v46  ;;  %v1428_v46 = vrot.slane %v4588_v45, %v4216_v28 }
 0x6c3   :  { %3675 = vmatprep.subr.bf16.mxu1 %v4099_v18 }
 0x6c6   :  { %3676 = vmatpush3.bf16.msra.mxu1 %v3958_v47 }
 0x6c7   :  { %3677 = vmatprep.subr.bf16.mxu1 %v4099_v18 }
 0x6ca   :  { %3678 = vmatpush3.bf16.msra.mxu1 %v3959_v57 }
 0x6cb   :  { %3679 = vmatprep.subr.bf16.mxu1 %v4099_v18 }
 0x6ce   :  { %3680 = vmatpush3.bf16.msra.mxu1 %v3960_v40 }
 0x6cf   :  { %3711 = vmatprep.subr.bf16.mxu1 %v4099_v18 }
 0x784   :  { %v1146_v0 = vpop.f32.mrb[32].mxu1 }
 0x785   :  { %v1153_v1 = vadd.f32 %v1146_v0, %v4186_v3  ;;  %v3655_v2 = vpop.f32.mrb[33].mxu1 }
 0x786   :  { %v1149_v5 = vpop.f32.mrb[34].mxu1 }
 0x787   :  { %v4490_v6 = vadd.f32 %v1158_v63, %v1153_v1  ;;  %v1154_v7 = vadd.f32 %v1149_v5, %v4188_v4  ;;  %v3656_v8 = vpop.f32.mrb[35].mxu1 }
 0x789   :  { %v4493_v9 = vadd.f32 %v1158_v63, %v1154_v7  ;;  %v1161_v10 = vsel %vm55_vm0, %v4490_v6, 0.0 }
 0x78a   :  { %1162 = vadd.xlane.f32.xlu1 %v1161_v10 }
 0x78b   :  { %v1164_v54 = vsel %vm55_vm0, %v4493_v9, 0.0 }
 0x78c   :  { %1165 = vadd.xlane.f32.xlu0 %v1164_v54 }
 0x817   :  { %v1163_v62 = vpop.xlane.xlu1 %1162 }
 0x818   :  { %v1167_v13 = vmul.f32 0.03125, %v1163_v62 }
 0x819   :  { %v1166_v3 = vpop.xlane.xlu0 %1165 }
 0x81a   :  { %v1169_v14 = vsub.f32 %v4490_v6, %v1167_v13  ;;  %v1168_v15 = vmul.f32 0.03125, %v1166_v3 }
 0x81c   :  { %v1170_v16 = vsub.f32 %v4493_v9, %v1168_v15  ;;  %v1171_v4 = vmul.f32 %v1169_v14, %v1169_v14 }
 0x81e   :  { %v1173_v17 = vsel %vm55_vm0, %v1171_v4, 0.0  ;;  %v1172_v20 = vmul.f32 %v1170_v16, %v1170_v16 }
 0x81f   :  { %1174 = vadd.xlane.f32.xlu0 %v1173_v17 }
 0x820   :  { %v1176_v21 = vsel %vm55_vm0, %v1172_v20, 0.0 }
 0x823   :  { %1177 = vadd.xlane.f32.xlu0 %v1176_v21 }
 0x8ac   :  { %v1175_v24 = vpop.xlane.xlu0 %1174 }
 0x8ad   :  { %v1179_v25 = vmul.f32 0.03125, %v1175_v24 }
 0x8af   :  { %v1181_v30 = vadd.f32 1e-05, %v1179_v25 }
 0x8b0   :  { %v1178_v53 = vpop.xlane.xlu0 %1177 }
 0x8b1   :  { %4013 = vrsqrt.f32 %v1181_v30  ;;  %v1180_v58 = vmul.f32 0.03125, %v1178_v53 }
 0x8b3   :  { %v1182_v31 = vadd.f32 1e-05, %v1180_v58 }
 0x8b5   :  { %4015 = vrsqrt.f32 %v1182_v31 }
 0x8bb   :  { %v4014_v49 = vpop.eup %4013 }
 0x8bc   :  { %v1185_v19 = vmul.f32 %v4014_v49, %v1169_v14 }
 0x8be   :  { %v1191_v35 = vmul.f32 %v1190_v51, %v1185_v19 }
 0x8bf   :  { %v4016_v34 = vpop.eup %4015 }
 0x8c0   :  { %v1186_v36 = vmul.f32 %v4016_v34, %v1170_v16  ;;  %v1197_v52 = vadd.f32 %v1196_v37, %v1191_v35  ;;  %v1393_v16 = vsub.s32 5, %v4213_v27 }
 0x8c2   :  { %v1192_v38 = vmul.f32 %v1190_v51, %v1186_v36  ;;  %v1394_v4 = vrot.slane %v4221_v29, %v1393_v16 }
 0x8c4   :  { %v1198_v39 = vadd.f32 %v1196_v37, %v1192_v38  ;;  %v3961_v37 = vld [vmem:[%s4946_s3 + $0x10] sm:$0xff]   ;;  %v3962_v38 = vld [vmem:[%s4946_s3 + $0x18] sm:$0xff]  }
 0x8c6   :  { %v1199_v26 = vpack.c.bf16 %v1198_v39, %v1197_v52 }
 0x8c8   :  { %3662 = vmatmul.mubr.msk.bf16.vlgmr.msra.gmra.mrb[36].mxu0 %vm55_vm0, %v1199_v26 }
 0x8c9   :  { %3689 = vmatprep.mubr.msk.bf16.mxu0 %vm4100_vm1, %v4099_v18  ;;  %3686 = vmatpush3.bf16.msra.mxu0 %v3961_v37 }
 0x8ca   :  { %3687 = vmatprep.subr.bf16.mxu0 %v4099_v18 }
 0x8cd   :  { %3688 = vmatpush3.bf16.msra.mxu0 %v3962_v38 }
 0x8ce   :  { %3693 = vmatprep.subr.bf16.mxu0 %v4099_v18 }
 0x99b   :  { %v1260_v48 = vpop.f32.mrb[36].mxu0 }
 0x99c   :  { %v1261_v55 = vadd.f32 %v3335_v44, %v1260_v48  ;;  %v3663_v56 = vpop.f32.mrb[37].mxu0 }
 0x99d   :  { %v1263_v59 = vpop.f32.mrb[38].mxu0 }
 0x99e   :  { %v3339_v60 = vmul.f32 -1.702, %v1261_v55  ;;  %v1264_v63 = vadd.f32 %v3335_v44, %v1263_v59  ;;  %v3664_v0 = vpop.f32.mrb[39].mxu0 }
 0x99f   :  { %v3355_v0 = vld [vmem:[%s4950_s7 + $0x1] ss:$0 sm:$0xff] }
 0x9a0   :  { %v1271_v1 = vmul.f32 1.442695, %v3339_v60  ;;  %v3340_v2 = vmul.f32 -1.702, %v1264_v63 }
 0x9a2   :  { %4017 = vpow2.f32 %v1271_v1  ;;  %v1273_v5 = vmul.f32 1.442695, %v3340_v2 }
 0x9a4   :  { %4019 = vpow2.f32 %v1273_v5 }
 0x9ac   :  { %v4018_v7 = vpop.eup %4017 }
 0x9ad   :  { %v1275_v8 = vadd.f32 1.0, %v4018_v7 }
 0x9ae   :  { %v4020_v10 = vpop.eup %4019 }
 0x9af   :  { %4021 = vrcp.f32 %v1275_v8  ;;  %v1276_v54 = vadd.f32 1.0, %v4020_v10 }
 0x9b1   :  { %4023 = vrcp.f32 %v1276_v54 }
 0x9b9   :  { %v4022_v62 = vpop.eup %4021 }
 0x9ba   :  { %v1281_v3 = vmul.f32 %v4022_v62, %v1261_v55  ;;  %v1434_v55 = vrot.slane %v4588_v45, %v4226_v33 }
 0x9bb   :  { %v4024_v13 = vpop.eup %4023 }
 0x9bc   :  { %v1282_v14 = vmul.f32 %v4024_v13, %v1264_v63 }
 0x9be   :  { %v1283_v15 = vpack.c.bf16 %v1282_v14, %v1281_v3 }
 0x9c0   :  { %3682 = vmatmul.mubr.bf16.vlgmr.msra.gmra.mrb[36].mxu1 %v1283_v15 }
 0x9c1   :  { %3713 = vmatprep.mubr.msk.bf16.mxu1 %vm4100_vm1, %v4099_v18 }
 0xa93   :  { %v1382_v17 = vpop.f32.mrb[36].mxu1 }
 0xa94   :  { %v1389_v20 = vadd.f32 %v1382_v17, %v4490_v6  ;;  %v3683_v21 = vpop.f32.mrb[37].mxu1 }
 0xa95   :  { %v1385_v22 = vpop.f32.mrb[38].mxu1 }
 0xa96   :  { %v4564_v23 = vadd.f32 %v1394_v4, %v1389_v20  ;;  %v1390_v24 = vadd.f32 %v1385_v22, %v4493_v9  ;;  %v3684_v25 = vpop.f32.mrb[39].mxu1 }
 0xa98   :  { %v4567_v30 = vadd.f32 %v1394_v4, %v1390_v24  ;;  %v1399_v53 = vsel %vm55_vm0, %v4564_v23, 0.0 }
 0xa99   :  { %1400 = vadd.xlane.f32.xlu1 %v1399_v53 }
 0xa9a   :  { %v1402_v58 = vsel %vm55_vm0, %v4567_v30, 0.0 }
 0xa9b   :  { %1403 = vadd.xlane.f32.xlu0 %v1402_v58 }
 0xb26   :  { %v1401_v29 = vpop.xlane.xlu1 %1400 }
 0xb27   :  { %v1405_v31 = vmul.f32 0.03125, %v1401_v29 }
 0xb28   :  { %v1404_v6 = vpop.xlane.xlu0 %1403 }
 0xb29   :  { %v1407_v49 = vsub.f32 %v4564_v23, %v1405_v31  ;;  %v1406_v51 = vmul.f32 0.03125, %v1404_v6 }
 0xb2b   :  { %v1408_v19 = vsub.f32 %v4567_v30, %v1406_v51  ;;  %v1409_v9 = vmul.f32 %v1407_v49, %v1407_v49 }
 0xb2d   :  { %v1411_v34 = vsel %vm55_vm0, %v1409_v9, 0.0  ;;  %v1410_v35 = vmul.f32 %v1408_v19, %v1408_v19 }
 0xb2e   :  { %1412 = vadd.xlane.f32.xlu1 %v1411_v34 }
 0xb2f   :  { %v1414_v36 = vsel %vm55_vm0, %v1410_v35, 0.0 }
 0xb30   :  { %1415 = vadd.xlane.f32.xlu0 %v1414_v36 }
 0xbbb   :  { %v1413_v52 = vpop.xlane.xlu1 %1412 }
 0xbbc   :  { %v1417_v39 = vmul.f32 0.03125, %v1413_v52 }
 0xbbd   :  { %v1416_v26 = vpop.xlane.xlu0 %1415 }
 0xbbe   :  { %v1419_v41 = vadd.f32 1e-05, %v1417_v39  ;;  %v1418_v42 = vmul.f32 0.03125, %v1416_v26 }
 0xbc0   :  { %4025 = vrsqrt.f32 %v1419_v41  ;;  %v1420_v43 = vadd.f32 1e-05, %v1418_v42 }
 0xbc2   :  { %4027 = vrsqrt.f32 %v1420_v43 }
 0xbca   :  { %v4026_v47 = vpop.eup %4025 }
 0xbcb   :  { %v1423_v57 = vmul.f32 %v4026_v47, %v1407_v49 }
 0xbcc   :  { %v4028_v40 = vpop.eup %4027 }
 0xbcd   :  { %v1429_v44 = vmul.f32 %v1428_v46, %v1423_v57  ;;  %v1424_v48 = vmul.f32 %v4028_v40, %v1408_v19 }
 0xbcf   :  { %v1430_v56 = vmul.f32 %v1428_v46, %v1424_v48  ;;  %v1435_v59 = vadd.f32 %v1434_v55, %v1429_v44 }
 0xbd1   :  { %v1436_v60 = vadd.f32 %v1434_v55, %v1430_v56 }
 0xbd3   :  { %v1437_v63 = vpack.c.bf16 %v1436_v60, %v1435_v59 }
 0xbd5   :  { %3690 = vmatmul.mubr.msk.bf16.vlgmr.msra.gmra.mrb[40].mxu0 %vm55_vm0, %v1437_v63 }
 0xbd6   :  { %3695 = vmatprep.mubr.msk.bf16.mxu0 %vm4100_vm1, %v4099_v18 }
 0xca8   :  { %v1500_v1 = vpop.f32.mrb[40].mxu0 }
 0xca9   :  { %v3691_v2 = vpop.f32.mrb[41].mxu0  ;;  %v1501_v7 = vadd.f32 %v3355_v0, %v1500_v1 }
 0xcaa   :  { %v1503_v5 = vpop.f32.mrb[42].mxu0 }
 0xcab   :  { %v1504_v8 = vadd.f32 %v3355_v0, %v1503_v5  ;;  %v3692_v10 = vpop.f32.mrb[43].mxu0 }
 0xcad   :  { %v1507_v54 = vpack.c.bf16 %v1504_v8, %v1501_v7 }
 0xcaf   :  { %1510 = vrot.lane.b32.xlu1 %v1507_v54, %s4101_s15  ;;  %v4601_v62 = vrot.slane %v1507_v54, 4 }
 0xcb1   :  { %1512 = vrot.lane.b32.xlu0 %v4601_v62, %s4101_s15 }
 0xcb3   :  { %1514 = vrot.lane.b32.xlu1 %v1507_v54, %s4103_s17 }
 0xcb5   :  { %1520 = vrot.lane.b32.xlu0 %v4601_v62, %s4102_s16 }
 0xcb7   :  { %1516 = vrot.lane.b32.xlu1 %v4601_v62, %s4103_s17 }
 0xcb9   :  { %1570 = vrot.lane.b32.xlu0 %v4601_v62, %s4104_s18 }
 0xcbb   :  { %1518 = vrot.lane.b32.xlu1 %v1507_v54, %s4102_s16 }
 0xcbf   :  { %1522 = vrot.lane.b32.xlu1 %v1507_v54, %s4104_s18 }
 0xd21   :  { %v4614_v13 = vpop.permute.xlu1 %1510 }
 0xd22   :  { %1618 = vrot.lane.b32.xlu1 %v4614_v13, %s4104_s18 }
 0xd23   :  { %v4618_v3 = vpop.permute.xlu0 %1512 }
 0xd24   :  { %1666 = vrot.lane.b32.xlu0 %v4618_v3, %s4104_s18 }
 0xd25   :  { %v4622_v14 = vpop.permute.xlu1 %1514 }
 0xd26   :  { %1714 = vrot.lane.b32.xlu1 %v4622_v14, %s4104_s18 }
 0xd27   :  { %v4630_v4 = vpop.permute.xlu0 %1520 }
 0xd29   :  { %v4626_v15 = vpop.permute.xlu1 %1516 }
 0xd2a   :  { %1762 = vrot.lane.b32.xlu0 %v4626_v15, %s4104_s18 }
 0xd2b   :  { %v1571_v22 = vpop.permute.xlu0 %1570 }
 0xd2c   :  { %v1576_v24 = vsel %vm180_vm2, %v1571_v22, 0 }
 0xd2d   :  { %v4632_v17 = vpop.permute.xlu1 %1518 }
 0xd2e   :  { %1810 = vrot.lane.b32.xlu1 %v4632_v17, %s4104_s18  ;;  %1858 = vrot.lane.b32.xlu0 %v4630_v4, %s4104_s18 }
 0xd31   :  { %v1523_v20 = vpop.permute.xlu1 %1522 }
 0xd32   :  { %v1528_v21 = vsel %vm180_vm2, %v1523_v20, 0  ;;  %2018 = vrot.lane.b32.xlu1 %v1507_v54, %s4105_s19 }
 0xd33   :  { %3694 = vmatpush3.bf16.xpose.msra.mxu0 %v1528_v21 }
 0xd34   :  { %3699 = vmatprep.subr.bf16.mxu0 %v4099_v18 }
 0xd3a   :  { %3696 = vmatmul.mubr.msk.bf16.vlgmr.msra.gmra.mrb[44].mxu0 %vm180_vm2, %v1507_v54 }
 0xd3b   :  { %3700 = vmatpush3.bf16.xpose.msra.mxu0 %v1576_v24  ;;  %3701 = vmatprep.mubr.msk.bf16.mxu0 %vm4100_vm1, %v4099_v18 }
 0xd3c   :  { %3705 = vmatprep.subr.bf16.mxu0 %v4099_v18 }
 0xd42   :  { %3702 = vmatmul.mubr.msk.bf16.vlgmr.msra.gmra.mrb[48].mxu0 %vm180_vm2, %v4601_v62 }
 0xd43   :  { %3707 = vmatprep.mubr.msk.bf16.mxu0 %vm4100_vm1, %v4099_v18 }
 0xd94   :  { %v1619_v25 = vpop.permute.xlu1 %1618 }
 0xd95   :  { %v1624_v53 = vsel %vm180_vm2, %v1619_v25, 0 }
 0xd96   :  { %3706 = vmatpush3.bf16.xpose.msra.mxu0 %v1624_v53  ;;  %v1667_v58 = vpop.permute.xlu0 %1666 }
 0xd97   :  { %v1672_v29 = vsel %vm180_vm2, %v1667_v58, 0  ;;  %3717 = vmatprep.subr.bf16.mxu0 %v4099_v18 }
 0xd98   :  { %3712 = vmatpush3.bf16.xpose.msra.mxu1 %v1672_v29  ;;  %v1715_v31 = vpop.permute.xlu1 %1714 }
 0xd99   :  { %3723 = vmatprep.subr.bf16.mxu1 %v4099_v18  ;;  %v1720_v49 = vsel %vm180_vm2, %v1715_v31, 0 }
 0xd9c   :  { %v1763_v6 = vpop.permute.xlu0 %1762 }
 0xd9d   :  { %3708 = vmatmul.mubr.msk.bf16.vlgmr.msra.gmra.mrb[52].mxu0 %vm180_vm2, %v4614_v13  ;;  %v1768_v51 = vsel %vm180_vm2, %v1763_v6, 0 }
 0xd9e   :  { %3718 = vmatpush3.bf16.xpose.msra.mxu0 %v1720_v49  ;;  %3719 = vmatprep.mubr.msk.bf16.mxu0 %vm4100_vm1, %v4099_v18 }
 0xd9f   :  { %3714 = vmatmul.mubr.msk.bf16.vlgmr.msra.gmra.mrb[40].mxu1 %vm180_vm2, %v4618_v3  ;;  %3729 = vmatprep.subr.bf16.mxu0 %v4099_v18 }
 0xda0   :  { %3724 = vmatpush3.bf16.xpose.msra.mxu1 %v1768_v51  ;;  %3725 = vmatprep.mubr.msk.bf16.mxu1 %vm4100_vm1, %v4099_v18  ;;  %v1811_v19 = vpop.permute.xlu1 %1810  ;;  %v1859_v9 = vpop.permute.xlu0 %1858 }
 0xda1   :  { %3735 = vmatprep.subr.bf16.mxu1 %v4099_v18  ;;  %v1816_v34 = vsel %vm180_vm2, %v1811_v19, 0  ;;  %v1864_v35 = vsel %vm180_vm2, %v1859_v9, 0 }
 0xda4   :  { %v2019_v36 = vpop.permute.xlu1 %2018 }
 0xda5   :  { %3720 = vmatmul.mubr.msk.bf16.vlgmr.msra.gmra.mrb[56].mxu0 %vm180_vm2, %v4622_v14  ;;  %v2024_v37 = vsel %vm680_vm4, %v2019_v36, 0 }
 0xda6   :  { %3730 = vmatpush3.bf16.xpose.msra.mxu0 %v1816_v34  ;;  %3731 = vmatprep.mubr.msk.bf16.mxu0 %vm4100_vm1, %v4099_v18 }
 0xda7   :  { %3726 = vmatmul.mubr.msk.bf16.vlgmr.msra.gmra.mrb[44].mxu1 %vm180_vm2, %v4626_v15  ;;  %3741 = vmatprep.subr.bf16.mxu0 %v4099_v18 }
 0xda8   :  { %3736 = vmatpush3.bf16.xpose.msra.mxu1 %v1864_v35  ;;  %3737 = vmatprep.mubr.msk.bf16.mxu1 %vm4100_vm1, %v4099_v18 }
 0xda9   :  { %3747 = vmatprep.subr.bf16.mxu1 %v4099_v18 }
 0xdad   :  { %3732 = vmatmul.mubr.msk.bf16.vlgmr.msra.gmra.mrb[60].mxu0 %vm180_vm2, %v4632_v17 }
 0xdae   :  { %3742 = vmatpush3.bf16.msra.mxu0 %v2024_v37  ;;  %3743 = vmatprep.mubr.msk.bf16.mxu0 %vm4100_vm1, %v4099_v18 }
 0xdaf   :  { %3738 = vmatmul.mubr.msk.bf16.vlgmr.msra.gmra.mrb[48].mxu1 %vm180_vm2, %v4630_v4  ;;  %3753 = vmatprep.subr.bf16.mxu0 %v4099_v18 }
 0xdb0   :  { %3749 = vmatprep.mubr.msk.bf16.mxu1 %vm4100_vm1, %v4099_v18 }
 0xe0d   :  { %v1564_v38 = vpop.f32.mrb[44].mxu0 }
 0xe0e   :  { %v1906_v52 = vmul.f32 0.35355338, %v1564_v38  ;;  %v3697_v39 = vpop.f32.mrb[45].mxu0 }
 0xe0f   :  { %v1567_v26 = vpop.f32.mrb[46].mxu0 }
 0xe10   :  { %v3698_v41 = vpop.f32.mrb[47].mxu0  ;;  %v4689_v42 = vadd.f32 %v1906_v52, %v4335_v12 }
 0xe12   :  { %v1922_v43 = vsel %vm180_vm2, %v4689_v42, -inf }
 0xe13   :  { %1923 = vmax.xlane.f32.xlu1 %v1922_v43 }
 0xe15   :  { %v1612_v46 = vpop.f32.mrb[48].mxu0 }
 0xe16   :  { %v1907_v47 = vmul.f32 0.35355338, %v1612_v46  ;;  %v3703_v57 = vpop.f32.mrb[49].mxu0 }
 0xe17   :  { %v1615_v40 = vpop.f32.mrb[50].mxu0 }
 0xe18   :  { %v3704_v44 = vpop.f32.mrb[51].mxu0  ;;  %v1915_v48 = vadd.f32 %v1907_v47, %v4335_v12 }
 0xe1a   :  { %v1925_v55 = vsel %vm180_vm2, %v1915_v48, -inf }
 0xe1b   :  { %1926 = vmax.xlane.f32.xlu0 %v1925_v55 }
 0xe70   :  { %v1660_v56 = vpop.f32.mrb[52].mxu0 }
 0xe71   :  { %v1908_v59 = vmul.f32 0.35355338, %v1660_v56  ;;  %v3709_v60 = vpop.f32.mrb[53].mxu0 }
 0xe72   :  { %v1663_v63 = vpop.f32.mrb[54].mxu0  ;;  %v1708_v0 = vpop.f32.mrb[40].mxu1 }
 0xe73   :  { %v1909_v1 = vmul.f32 0.35355338, %v1708_v0  ;;  %v3710_v2 = vpop.f32.mrb[55].mxu0  ;;  %v3715_v5 = vpop.f32.mrb[41].mxu1  ;;  %v1916_v7 = vadd.f32 %v1908_v59, %v4335_v12 }
 0xe74   :  { %v1711_v8 = vpop.f32.mrb[42].mxu1 }
 0xe75   :  { %v3716_v10 = vpop.f32.mrb[43].mxu1  ;;  %v1928_v54 = vsel %vm180_vm2, %v1916_v7, -inf  ;;  %v1917_v20 = vadd.f32 %v1909_v1, %v4335_v12 }
 0xe76   :  { %1929 = vmax.xlane.f32.xlu0 %v1928_v54 }
 0xe77   :  { %v1931_v25 = vsel %vm180_vm2, %v1917_v20, -inf }
 0xe78   :  { %v1756_v21 = vpop.f32.mrb[56].mxu0 }
 0xe79   :  { %v1910_v22 = vmul.f32 0.35355338, %v1756_v21  ;;  %v3721_v24 = vpop.f32.mrb[57].mxu0 }
 0xe7a   :  { %v1804_v53 = vpop.f32.mrb[44].mxu1  ;;  %1932 = vmax.xlane.f32.xlu0 %v1931_v25  ;;  %v1759_v58 = vpop.f32.mrb[58].mxu0 }
 0xe7b   :  { %v1911_v29 = vmul.f32 0.35355338, %v1804_v53  ;;  %v3722_v31 = vpop.f32.mrb[59].mxu0  ;;  %v3727_v6 = vpop.f32.mrb[45].mxu1  ;;  %v1918_v49 = vadd.f32 %v1910_v22, %v4335_v12 }
 0xe7c   :  { %v1807_v51 = vpop.f32.mrb[46].mxu1 }
 0xe7d   :  { %v3728_v19 = vpop.f32.mrb[47].mxu1  ;;  %v1934_v9 = vsel %vm180_vm2, %v1918_v49, -inf  ;;  %v4702_v34 = vadd.f32 %v1911_v29, %v4335_v12 }
 0xe7e   :  { %1935 = vmax.xlane.f32.xlu1 %v1934_v9 }
 0xe7f   :  { %v1937_v35 = vsel %vm180_vm2, %v4702_v34, -inf }
 0xe80   :  { %1938 = vmax.xlane.f32.xlu0 %v1937_v35  ;;  %v1852_v36 = vpop.f32.mrb[60].mxu0 }
 0xe81   :  { %v1912_v37 = vmul.f32 0.35355338, %v1852_v36  ;;  %v3733_v38 = vpop.f32.mrb[61].mxu0 }
 0xe82   :  { %v1855_v52 = vpop.f32.mrb[62].mxu0  ;;  %v1900_v39 = vpop.f32.mrb[48].mxu1 }
 0xe83   :  { %v1913_v26 = vmul.f32 0.35355338, %v1900_v39  ;;  %v3734_v41 = vpop.f32.mrb[63].mxu0  ;;  %v3739_v43 = vpop.f32.mrb[49].mxu1  ;;  %v1920_v46 = vadd.f32 %v1912_v37, %v4335_v12 }
 0xe84   :  { %v1903_v47 = vpop.f32.mrb[50].mxu1 }
 0xe85   :  { %v3740_v57 = vpop.f32.mrb[51].mxu1  ;;  %v1940_v40 = vsel %vm180_vm2, %v1920_v46, -inf  ;;  %v1921_v44 = vadd.f32 %v1913_v26, %v4335_v12 }
 0xe86   :  { %1941 = vmax.xlane.f32.xlu1 %v1940_v40 }
 0xe87   :  { %v1943_v55 = vsel %vm180_vm2, %v1921_v44, -inf }
 0xe88   :  { %1944 = vmax.xlane.f32.xlu0 %v1943_v55 }
 0xe97   :  { %2114 = vrot.lane.b32.xlu1 %v4614_v13, %s4105_s19 }
 0xe9b   :  { %2162 = vrot.lane.b32.xlu1 %v4618_v3, %s4105_s19 }
 0xe9e   :  { %2066 = vrot.lane.b32.xlu0 %v4601_v62, %s4105_s19 }
 0xea0   :  { %v1924_v56 = vpop.xlane.xlu1 %1923 }
 0xea1   :  { %v1946_v60 = vsub.f32 %v4689_v42, %v1924_v56 }
 0xea3   :  { %v1954_v12 = vmul.f32 1.442695, %v1946_v60 }
 0xea8   :  { %v1927_v59 = vpop.xlane.xlu0 %1926 }
 0xea9   :  { %v1947_v63 = vsub.f32 %v1915_v48, %v1927_v59 }
 0xeab   :  { %v1956_v0 = vmul.f32 1.442695, %v1947_v63 }
 0xead   :  { %4029 = vpow2.f32 %v1956_v0 }
 0xeae   :  { %4031 = vpow2.f32 %v1954_v12 }
 0xeb7   :  { %v4030_v1 = vpop.eup %4029 }
 0xeb8   :  { %v4717_v2 = vpop.eup %4031  ;;  %v1973_v13 = vsel %vm180_vm2, %v4030_v1, 0.0 }
 0xeb9   :  { %v1970_v3 = vsel %vm180_vm2, %v4717_v2, 0.0 }
 0xebd   :  { %1974 = vadd.xlane.f32.xlu0 %v1973_v13 }
 0xebf   :  { %1971 = vadd.xlane.f32.xlu1 %v1970_v3 }
 0xed0   :  { %2210 = vrot.lane.b32.xlu1 %v4622_v14, %s4105_s19 }
 0xf03   :  { %v1930_v62 = vpop.xlane.xlu0 %1929 }
 0xf04   :  { %v1948_v42 = vsub.f32 %v1916_v7, %v1930_v62 }
 0xf06   :  { %v1958_v48 = vmul.f32 1.442695, %v1948_v42 }
 0xf07   :  { %v1933_v5 = vpop.xlane.xlu0 %1932 }
 0xf08   :  { %4033 = vpow2.f32 %v1958_v48  ;;  %v1949_v8 = vsub.f32 %v1917_v20, %v1933_v5 }
 0xf0a   :  { %v1960_v10 = vmul.f32 1.442695, %v1949_v8 }
 0xf0b   :  { %v1936_v54 = vpop.xlane.xlu1 %1935 }
 0xf0c   :  { %4035 = vpow2.f32 %v1960_v10  ;;  %v1950_v21 = vsub.f32 %v1918_v49, %v1936_v54 }
 0xf0d   :  { %v1939_v24 = vpop.xlane.xlu0 %1938 }
 0xf0e   :  { %v1962_v22 = vmul.f32 1.442695, %v1950_v21  ;;  %v1951_v36 = vsub.f32 %v4702_v34, %v1939_v24 }
 0xf10   :  { %4037 = vpow2.f32 %v1962_v22  ;;  %v1964_v37 = vmul.f32 1.442695, %v1951_v36 }
 0xf12   :  { %v4724_v25 = vpop.eup %4033 }
 0xf13   :  { %v1942_v53 = vpop.xlane.xlu1 %1941  ;;  %v1976_v58 = vsel %vm180_vm2, %v4724_v25, 0.0 }
 0xf14   :  { %v1952_v14 = vsub.f32 %v1920_v46, %v1942_v53  ;;  %1977 = vadd.xlane.f32.xlu1 %v1976_v58 }
 0xf15   :  { %v1945_v7 = vpop.xlane.xlu0 %1944 }
 0xf16   :  { %v4728_v29 = vpop.eup %4035  ;;  %v1966_v31 = vmul.f32 1.442695, %v1952_v14  ;;  %v1953_v38 = vsub.f32 %v1921_v44, %v1945_v7 }
 0xf17   :  { %v1979_v20 = vsel %vm180_vm2, %v4728_v29, 0.0  ;;  %v2115_v39 = vpop.permute.xlu1 %2114 }
 0xf18   :  { %4039 = vpow2.f32 %v1966_v31  ;;  %1980 = vadd.xlane.f32.xlu0 %v1979_v20  ;;  %v1968_v52 = vmul.f32 1.442695, %v1953_v38  ;;  %v2120_v60 = vsel %vm680_vm4, %v2115_v39, 0 }
 0xf19   :  { %v2067_v6 = vpop.permute.xlu0 %2066  ;;  %4041 = vpow2.f32 %v1964_v37 }
 0xf1a   :  { %v4732_v49 = vpop.eup %4037  ;;  %v2072_v51 = vsel %vm680_vm4, %v2067_v6, 0  ;;  %4043 = vpow2.f32 %v1968_v52 }
 0xf1b   :  { %3748 = vmatpush3.bf16.msra.mxu1 %v2072_v51  ;;  %v1982_v19 = vsel %vm180_vm2, %v4732_v49, 0.0  ;;  %v2163_v26 = vpop.permute.xlu1 %2162 }
 0xf1c   :  { %1983 = vadd.xlane.f32.xlu1 %v1982_v19  ;;  %3759 = vmatprep.subr.bf16.mxu1 %v4099_v18  ;;  %v2168_v56 = vsel %vm680_vm4, %v2163_v26, 0 }
 0xf22   :  { %v4738_v9 = vpop.eup %4039 }
 0xf23   :  { %v1988_v35 = vsel %vm180_vm2, %v4738_v9, 0.0  ;;  %v4747_v41 = vpop.eup %4041 }
 0xf24   :  { %1989 = vadd.xlane.f32.xlu1 %v1988_v35  ;;  %v4751_v47 = vpop.eup %4043 }
 0xf2e   :  { %2258 = vrot.lane.b32.xlu0 %v4626_v15, %s4105_s19  ;;  %v1985_v15 = vsel %vm180_vm2, %v4747_v41, 0.0 }
 0xf35   :  { %2306 = vrot.lane.b32.xlu1 %v4632_v17, %s4105_s19  ;;  %v1991_v17 = vsel %vm180_vm2, %v4751_v47, 0.0 }
 0xf4a   :  { %v1975_v43 = vpop.xlane.xlu0 %1974 }
 0xf4b   :  { %4045 = vrcp.f32 %v1975_v43 }
 0xf4c   :  { %v1972_v46 = vpop.xlane.xlu1 %1971 }
 0xf4d   :  { %4047 = vrcp.f32 %v1972_v46  ;;  %1986 = vadd.xlane.f32.xlu0 %v1985_v15 }
 0xf50   :  { %v2211_v63 = vpop.permute.xlu1 %2210 }
 0xf51   :  { %1992 = vadd.xlane.f32.xlu0 %v1991_v17  ;;  %v2216_v42 = vsel %vm680_vm4, %v2211_v63, 0 }
 0xf55   :  { %v4046_v34 = vpop.eup %4045 }
 0xf56   :  { %v1997_v57 = vmul.f32 %v4046_v34, %v4030_v1 }
 0xf57   :  { %v4048_v40 = vpop.eup %4047 }
 0xf58   :  { %v1995_v44 = vmul.f32 %v4048_v40, %v4717_v2  ;;  %v2011_v55 = vpack.c.bf16 %v1997_v57, %v1997_v57 }
 0xf5a   :  { %3750 = vmatmul.mubr.msk.bf16.vlgmr.msra.gmra.mrb[52].mxu1 %vm180_vm2, %v2011_v55  ;;  %v2010_v59 = vpack.c.bf16 %v1995_v44, %v1995_v44 }
 0xf5b   :  { %3760 = vmatpush3.bf16.msra.mxu1 %v2168_v56  ;;  %3761 = vmatprep.mubr.msk.bf16.mxu1 %vm4100_vm1, %v4099_v18 }
 0xf5c   :  { %3744 = vmatmul.mubr.msk.bf16.vlgmr.msra.gmra.mrb[64].mxu0 %vm180_vm2, %v2010_v59  ;;  %3771 = vmatprep.subr.bf16.mxu1 %v4099_v18 }
 0xf5d   :  { %3754 = vmatpush3.bf16.msra.mxu0 %v2120_v60  ;;  %3755 = vmatprep.mubr.msk.bf16.mxu0 %vm4100_vm1, %v4099_v18 }
 0xf5e   :  { %3765 = vmatprep.subr.bf16.mxu0 %v4099_v18 }
 0xf67   :  { %2354 = vrot.lane.b32.xlu0 %v4630_v4, %s4105_s19 }
 0xfa1   :  { %v1978_v0 = vpop.xlane.xlu1 %1977 }
 0xfa2   :  { %4049 = vrcp.f32 %v1978_v0 }
 0xfa5   :  { %v1981_v12 = vpop.xlane.xlu0 %1980 }
 0xfa6   :  { %4051 = vrcp.f32 %v1981_v12 }
 0xfa9   :  { %v1984_v1 = vpop.xlane.xlu1 %1983  ;;  %v2259_v4 = vpop.permute.xlu0 %2258 }
 0xfaa   :  { %4053 = vrcp.f32 %v1984_v1  ;;  %v2264_v54 = vsel %vm680_vm4, %v2259_v4, 0 }
 0xfac   :  { %v4050_v2 = vpop.eup %4049 }
 0xfad   :  { %v1999_v13 = vmul.f32 %v4050_v2, %v4724_v25 }
 0xfaf   :  { %v2012_v3 = vpack.c.bf16 %v1999_v13, %v1999_v13  ;;  %v3963_v13 = vld [vmem:[%s4947_s4 + $0x10] sm:$0xff]  }
 0xfb0   :  { %v4052_v62 = vpop.eup %4051 }
 0xfb1   :  { %v2001_v48 = vmul.f32 %v4052_v62, %v4728_v29  ;;  %3756 = vmatmul.mubr.msk.bf16.vlgmr.msra.gmra.mrb[68].mxu0 %vm180_vm2, %v2012_v3  ;;  %v1990_v5 = vpop.xlane.xlu1 %1989  ;;  %v3964_v3 = vld [vmem:[%s4947_s4 + $0x18] sm:$0xff]  }
 0xfb2   :  { %3766 = vmatpush3.bf16.msra.mxu0 %v2216_v42  ;;  %4055 = vrcp.f32 %v1990_v5  ;;  %3767 = vmatprep.mubr.msk.bf16.mxu0 %vm4100_vm1, %v4099_v18 }
 0xfb3   :  { %v2013_v8 = vpack.c.bf16 %v2001_v48, %v2001_v48  ;;  %3777 = vmatprep.subr.bf16.mxu0 %v4099_v18 }
 0xfb4   :  { %v4054_v10 = vpop.eup %4053 }
 0xfb5   :  { %v2003_v21 = vmul.f32 %v4054_v10, %v4732_v49  ;;  %3762 = vmatmul.mubr.msk.bf16.vlgmr.msra.gmra.mrb[56].mxu1 %vm180_vm2, %v2013_v8  ;;  %v2307_v22 = vpop.permute.xlu1 %2306 }
 0xfb6   :  { %3772 = vmatpush3.bf16.msra.mxu1 %v2264_v54  ;;  %3773 = vmatprep.mubr.msk.bf16.mxu1 %vm4100_vm1, %v4099_v18  ;;  %v2312_v25 = vsel %vm680_vm4, %v2307_v22, 0 }
 0xfb7   :  { %v2014_v24 = vpack.c.bf16 %v2003_v21, %v2003_v21  ;;  %3783 = vmatprep.subr.bf16.mxu1 %v4099_v18 }
 0xfb9   :  { %3768 = vmatmul.mubr.msk.bf16.vlgmr.msra.gmra.mrb[72].mxu0 %vm180_vm2, %v2014_v24 }
 0xfba   :  { %3778 = vmatpush3.bf16.msra.mxu0 %v2312_v25  ;;  %3779 = vmatprep.mubr.msk.bf16.mxu0 %vm4100_vm1, %v4099_v18 }
 0xfbb   :  { %3789 = vmatprep.subr.bf16.mxu0 %v4099_v18 }
 0xfbc   :  { %v4056_v53 = vpop.eup %4055 }
 0xfbd   :  { %v2007_v58 = vmul.f32 %v4056_v53, %v4738_v9 }
 0xfbf   :  { %v2016_v14 = vpack.c.bf16 %v2007_v58, %v2007_v58 }
 0xfc1   :  { %3780 = vmatmul.mubr.msk.bf16.vlgmr.msra.gmra.mrb[76].mxu0 %vm180_vm2, %v2016_v14 }
 0xfc2   :  { %3793 = vmatprep.mubr.msk.bf16.mxu0 %vm4100_vm1, %v4099_v18  ;;  %3790 = vmatpush3.bf16.msra.mxu0 %v3963_v13 }
 0xfc3   :  { %3791 = vmatprep.subr.bf16.mxu0 %v4099_v18 }
 0xfc6   :  { %3792 = vmatpush3.bf16.msra.mxu0 %v3964_v3 }
 0xfc7   :  { %3805 = vmatprep.subr.bf16.mxu0 %v4099_v18 }
 0xfda   :  { %v1987_v7 = vpop.xlane.xlu0 %1986 }
 0xfdb   :  { %4057 = vrcp.f32 %v1987_v7 }
 0xfde   :  { %v1993_v29 = vpop.xlane.xlu0 %1992 }
 0xfdf   :  { %4059 = vrcp.f32 %v1993_v29 }
 0xfe2   :  { %v2355_v6 = vpop.permute.xlu0 %2354 }
 0xfe3   :  { %v2360_v19 = vsel %vm680_vm4, %v2355_v6, 0 }
 0xfe5   :  { %v4058_v31 = vpop.eup %4057 }
 0xfe6   :  { %v2005_v20 = vmul.f32 %v4058_v31, %v4747_v41 }
 0xfe8   :  { %v2015_v49 = vpack.c.bf16 %v2005_v20, %v2005_v20 }
 0xfe9   :  { %v4060_v51 = vpop.eup %4059 }
 0xfea   :  { %3774 = vmatmul.mubr.msk.bf16.vlgmr.msra.gmra.mrb[60].mxu1 %vm180_vm2, %v2015_v49  ;;  %v2009_v9 = vmul.f32 %v4060_v51, %v4751_v47 }
 0xfeb   :  { %3784 = vmatpush3.bf16.msra.mxu1 %v2360_v19  ;;  %3785 = vmatprep.mubr.msk.bf16.mxu1 %vm4100_vm1, %v4099_v18 }
 0xfec   :  { %3797 = vmatprep.subr.bf16.mxu1 %v4099_v18  ;;  %v2017_v35 = vpack.c.bf16 %v2009_v9, %v2009_v9 }
 0xff2   :  { %3786 = vmatmul.mubr.msk.bf16.vlgmr.msra.gmra.mrb[64].mxu1 %vm180_vm2, %v2017_v35 }
 0xff3   :  { %3801 = vmatprep.mubr.msk.bf16.mxu1 %vm4100_vm1, %v4099_v18 }
0x102d   :  { %v2108_v36 = vpop.f32.mrb[52].mxu1 }
0x102e   :  { %v3751_v37 = vpop.f32.mrb[53].mxu1 }
0x102f   :  { %v2060_v38 = vpop.f32.mrb[64].mxu0  ;;  %v2111_v52 = vpop.f32.mrb[54].mxu1 }
0x1030   :  { %v3745_v39 = vpop.f32.mrb[65].mxu0  ;;  %v3752_v26 = vpop.f32.mrb[55].mxu1 }
0x1031   :  { %v2063_v41 = vpop.f32.mrb[66].mxu0 }
0x1032   :  { %v3746_v43 = vpop.f32.mrb[67].mxu0 }
0x1084   :  { %v2156_v46 = vpop.f32.mrb[68].mxu0 }
0x1085   :  { %v3757_v15 = vpop.f32.mrb[69].mxu0 }
0x1086   :  { %v2159_v17 = vpop.f32.mrb[70].mxu0 }
0x1087   :  { %v3758_v47 = vpop.f32.mrb[71].mxu0 }
0x1088   :  { %v2204_v34 = vpop.f32.mrb[56].mxu1 }
0x1089   :  { %v3931_v57 = vpack.i.bf16 %v2204_v34, %v2156_v46  ;;  %v3763_v40 = vpop.f32.mrb[57].mxu1 }
0x108a   :  { %v2207_v44 = vpop.f32.mrb[58].mxu1 }
0x108b   :  { %v3764_v55 = vpop.f32.mrb[59].mxu1  ;;  %3932 = vrot.lane.b32.xlu1 %v3931_v57, %s4106_s20 }
0x108c   :  { %v2252_v56 = vpop.f32.mrb[72].mxu0 }
0x108d   :  { %v3769_v59 = vpop.f32.mrb[73].mxu0 }
0x108e   :  { %v2255_v60 = vpop.f32.mrb[74].mxu0 }
0x108f   :  { %v3770_v63 = vpop.f32.mrb[75].mxu0  ;;  %v3965_v60 = vld [vmem:[%s4948_s5 + $0x10] sm:$0xff]  }
0x1090   :  { %3798 = vmatpush3.bf16.msra.mxu1 %v3965_v60  ;;  %v3966_v63 = vld [vmem:[%s4948_s5 + $0x18] sm:$0xff]   ;;  %v2738_v60 = vrot.slane %v4588_v45, %v1393_v16 }
0x1091   :  { %3799 = vmatprep.subr.bf16.mxu1 %v4099_v18 }
0x1094   :  { %v2348_v0 = vpop.f32.mrb[76].mxu0  ;;  %3800 = vmatpush3.bf16.msra.mxu1 %v3966_v63 }
0x1095   :  { %v3781_v12 = vpop.f32.mrb[77].mxu0 }
0x1096   :  { %v2351_v1 = vpop.f32.mrb[78].mxu0 }
0x1097   :  { %v3782_v2 = vpop.f32.mrb[79].mxu0 }
0x10bd   :  { %v2300_v62 = vpop.f32.mrb[60].mxu1 }
0x10be   :  { %v3936_v42 = vpack.i.bf16 %v2300_v62, %v2252_v56  ;;  %v3775_v48 = vpop.f32.mrb[61].mxu1 }
0x10bf   :  { %v2303_v5 = vpop.f32.mrb[62].mxu1 }
0x10c0   :  { %v3776_v4 = vpop.f32.mrb[63].mxu1  ;;  %3937 = vrot.lane.b32.xlu0 %v3936_v42, %s4107_s23  ;;  %v2531_v42 = vrot.slane %v4588_v45, %v1189_v50  ;;  %v3967_v50 = vld [vmem:[%s4949_s6 + $0x40] sm:$0xff]  }
0x10c5   :  { %v2396_v8 = vpop.f32.mrb[64].mxu1 }
0x10c6   :  { %v3941_v10 = vpack.i.bf16 %v2396_v8, %v2348_v0  ;;  %v3787_v54 = vpop.f32.mrb[65].mxu1 }
0x10c7   :  { %v2399_v21 = vpop.f32.mrb[66].mxu1 }
0x10c8   :  { %v3788_v22 = vpop.f32.mrb[67].mxu1  ;;  %3942 = vrot.lane.b32.xlu1 %v3941_v10, %s4108_s26  ;;  %v2537_v10 = vrot.slane %v4588_v45, %v1195_v32  ;;  %v3968_v32 = vld [vmem:[%s4949_s6 + $0x48] sm:$0xff]  }
0x10fd   :  { %v3933_v24 = vpop.permute.xlu1 %3932 }
0x10fe   :  { %v3935_v53 = vunpack.i.h.bf16 %v3933_v24  ;;  %v3934_v58 = vunpack.i.l.bf16 %v3933_v24 }
0x1100   :  { %v2429_v31 = vsel %vm180_vm2, %v2108_v36, %v3935_v53  ;;  %v2414_v20 = vsel %vm180_vm2, %v2060_v38, %v3934_v58  ;;  %v2499_v36 = vrot.slane %v4588_v45, %v1157_v61  ;;  %v3970_v53 = vld [vmem:[%s4949_s6 + $0x58] sm:$0xff]   ;;  %v3971_v58 = vld [vmem:[%s4949_s6 + $0x60] sm:$0xff]  }
0x1132   :  { %v3938_v25 = vpop.permute.xlu0 %3937 }
0x1133   :  { %v3940_v14 = vunpack.i.h.bf16 %v3938_v25  ;;  %v3939_v7 = vunpack.i.l.bf16 %v3938_v25  ;;  %v3969_v25 = vld [vmem:[%s4949_s6 + $0x50] sm:$0xff]  }
0x1135   :  { %v2430_v51 = vsel %vm1073_vm5, %v2429_v31, %v3940_v14  ;;  %v2415_v19 = vsel %vm1073_vm5, %v2414_v20, %v3939_v7  ;;  %v3972_v14 = vld [vmem:[%s4949_s6 + $0x68] sm:$0xff]   ;;  %v3973_v7 = vld [vmem:[%s4949_s6 + $0x70] sm:$0xff]   ;;  %v2741_v31 = vld [vmem:[%s4945_s2] sm:$0x3]  ;;  %v4109_v20 = vmov 0  }
0x1136   :  { %3946 = vset.pattern.permute.xlu0 %v4109_v20 }
0x113a   :  { %v3943_v29 = vpop.permute.xlu1 %3942 }
0x113b   :  { %v3945_v6 = vunpack.i.h.bf16 %v3943_v29  ;;  %v3944_v49 = vunpack.i.l.bf16 %v3943_v29  ;;  %v3974_v29 = vld [vmem:[%s4949_s6 + $0x78] sm:$0xff]  }
0x113d   :  { %v2431_v9 = vsel %vm1075_vm6, %v2430_v51, %v3945_v6  ;;  %v2416_v35 = vsel %vm1075_vm6, %v2415_v19, %v3944_v49  ;;  %v3387_v6 = vld [vmem:[%s4951_s8 + $0x1] ss:$0 sm:$0xff] }
0x113e   :  { %v2432_v37 = vpack.c.bf16 %v2431_v9, %v2416_v35 }
0x1140   :  { %3794 = vmatmul.mubr.msk.bf16.vlgmr.msra.gmra.mrb[80].mxu0 %vm55_vm0, %v2432_v37 }
0x1141   :  { %3821 = vmatprep.mubr.msk.bf16.mxu0 %vm4100_vm1, %v4099_v18  ;;  %3806 = vmatpush3.bf16.msra.mxu0 %v3967_v50 }
0x1142   :  { %3807 = vmatprep.subr.bf16.mxu0 %v4099_v18 }
0x1145   :  { %3808 = vmatpush3.bf16.msra.mxu0 %v3968_v32 }
0x1146   :  { %3809 = vmatprep.subr.bf16.mxu0 %v4099_v18 }
0x1149   :  { %3810 = vmatpush3.bf16.msra.mxu0 %v3969_v25 }
0x114a   :  { %3811 = vmatprep.subr.bf16.mxu0 %v4099_v18 }
0x114d   :  { %3812 = vmatpush3.bf16.msra.mxu0 %v3970_v53 }
0x114e   :  { %3813 = vmatprep.subr.bf16.mxu0 %v4099_v18 }
0x1151   :  { %3814 = vmatpush3.bf16.msra.mxu0 %v3971_v58 }
0x1152   :  { %3815 = vmatprep.subr.bf16.mxu0 %v4099_v18 }
0x1155   :  { %3816 = vmatpush3.bf16.msra.mxu0 %v3972_v14 }
0x1156   :  { %3817 = vmatprep.subr.bf16.mxu0 %v4099_v18 }
0x1159   :  { %3818 = vmatpush3.bf16.msra.mxu0 %v3973_v7 }
0x115a   :  { %3819 = vmatprep.subr.bf16.mxu0 %v4099_v18 }
0x115d   :  { %3820 = vmatpush3.bf16.msra.mxu0 %v3974_v29 }
0x1213   :  { %v2487_v38 = vpop.f32.mrb[80].mxu0 }
0x1214   :  { %v2494_v52 = vadd.f32 %v2487_v38, %v4564_v23  ;;  %v3795_v39 = vpop.f32.mrb[81].mxu0 }
0x1215   :  { %v2490_v26 = vpop.f32.mrb[82].mxu0 }
0x1216   :  { %v4824_v41 = vadd.f32 %v2499_v36, %v2494_v52  ;;  %v2495_v43 = vadd.f32 %v2490_v26, %v4567_v30  ;;  %v3796_v46 = vpop.f32.mrb[83].mxu0 }
0x1218   :  { %v4827_v15 = vadd.f32 %v2499_v36, %v2495_v43  ;;  %v2502_v17 = vsel %vm55_vm0, %v4824_v41, 0.0 }
0x1219   :  { %2503 = vadd.xlane.f32.xlu0 %v2502_v17 }
0x121a   :  { %v2505_v47 = vsel %vm55_vm0, %v4827_v15, 0.0 }
0x121b   :  { %2506 = vadd.xlane.f32.xlu1 %v2505_v47 }
0x12a6   :  { %v2504_v61 = vpop.xlane.xlu0 %2503 }
0x12a7   :  { %v2508_v34 = vmul.f32 0.03125, %v2504_v61 }
0x12a8   :  { %v2507_v23 = vpop.xlane.xlu1 %2506 }
0x12a9   :  { %v2510_v57 = vsub.f32 %v4824_v41, %v2508_v34  ;;  %v2509_v40 = vmul.f32 0.03125, %v2507_v23 }
0x12ab   :  { %v2511_v44 = vsub.f32 %v4827_v15, %v2509_v40  ;;  %v2512_v30 = vmul.f32 %v2510_v57, %v2510_v57  ;;  %v4110_v40 = vmov 0.0|0.0  }
0x12ac   :  { %3875 = vmatprep.subr.bf16.mxu1 %v4110_v40 }
0x12ad   :  { %v2514_v55 = vsel %vm55_vm0, %v2512_v30, 0.0  ;;  %v2513_v56 = vmul.f32 %v2511_v44, %v2511_v44 }
0x12ae   :  { %2515 = vadd.xlane.f32.xlu0 %v2514_v55 }
0x12af   :  { %v2517_v59 = vsel %vm55_vm0, %v2513_v56, 0.0 }
0x12b2   :  { %2518 = vadd.xlane.f32.xlu0 %v2517_v59 }
0x12c8   :  { %2744 = vperm.xlu0 %3946, %v2741_v31  }
0x133b   :  { %v2516_v0 = vpop.xlane.xlu0 %2515 }
0x133c   :  { %v2520_v12 = vmul.f32 0.03125, %v2516_v0 }
0x133e   :  { %v2522_v1 = vadd.f32 1e-05, %v2520_v12 }
0x133f   :  { %v2519_v2 = vpop.xlane.xlu0 %2518 }
0x1340   :  { %4061 = vrsqrt.f32 %v2522_v1  ;;  %v2521_v13 = vmul.f32 0.03125, %v2519_v2 }
0x1342   :  { %v2523_v3 = vadd.f32 1e-05, %v2521_v13 }
0x1344   :  { %4063 = vrsqrt.f32 %v2523_v3 }
0x1347   :  { %v2745_v30 = vpop.permute.xlu0 %2744 }
0x134a   :  { %v4062_v62 = vpop.eup %4061 }
0x134b   :  { %v2526_v48 = vmul.f32 %v4062_v62, %v2510_v57 }
0x134d   :  { %v2532_v4 = vmul.f32 %v2531_v42, %v2526_v48 }
0x134e   :  { %v4064_v5 = vpop.eup %4063 }
0x134f   :  { %v2527_v8 = vmul.f32 %v4064_v5, %v2511_v44  ;;  %v2538_v21 = vadd.f32 %v2537_v10, %v2532_v4  ;;  %v2742_v44 = vmul.u32 8, %v4213_v27 }
0x1351   :  { %v2533_v54 = vmul.f32 %v2531_v42, %v2527_v8  ;;  %v2746_v55 = vadd.s32 %v2745_v30, %v2742_v44 }
0x1353   :  { %v2539_v22 = vadd.f32 %v2537_v10, %v2533_v54  ;;  %vm2747_vm7 = vcmp.eq.s32.totalorder %v4330_v11, %v2746_v55 }
0x1354   :  { %v3417_v56 = vsel %vm2747_vm7, 1.0, %v4099_v18 }
0x1355   :  { %v2540_v24 = vpack.c.bf16 %v2539_v22, %v2538_v21  ;;  %v2751_v59 = vsel %vm1073_vm5, %v3417_v56, 0 }
0x1356   :  { %v2821_v63 = vsub.f32 %v2751_v59, %v2751_v59 }
0x1357   :  { %3802 = vmatmul.mubr.msk.bf16.vlgmr.msra.gmra.mrb[68].mxu1 %vm55_vm0, %v2540_v24 }
0x1358   :  { %3829 = vmatprep.mubr.msk.f32.mxu1 %vm4100_vm1, %v4099_v18  ;;  %v2822_v42 = vand.u32 4294901760, %v2821_v63 }
0x135a   :  { %v2823_v8 = vsub.f32 %v2821_v63, %v2822_v42 }
0x142a   :  { %v2603_v49 = vpop.f32.mrb[68].mxu1 }
0x142b   :  { %v2604_v51 = vadd.f32 %v3387_v6, %v2603_v49  ;;  %v3803_v19 = vpop.f32.mrb[69].mxu1  ;;  %v3976_v49 = vld [vmem:[%s4954_s11 + $0x8] sm:$0xff]  }
0x142c   :  { %v2606_v9 = vpop.f32.mrb[70].mxu1 }
0x142d   :  { %v3391_v35 = vmul.f32 -1.702, %v2604_v51  ;;  %v2607_v37 = vadd.f32 %v3387_v6, %v2606_v9  ;;  %v3804_v36 = vpop.f32.mrb[71].mxu1  ;;  %v3975_v6 = vld [vmem:[%s4954_s11] sm:$0xff]   ;;  %s4111_s11 = smov [#allocation2]  }
0x142e   :  { %s3304_s19 = sshll.u32 %s4111_s11, 4  ;;  %s3305_s19 = int_to_ptr.vmem [resolvable:$true] %s3304_s19 }
0x142f   :  { %v2614_v38 = vmul.f32 1.442695, %v3391_v35  ;;  %v3392_v52 = vmul.f32 -1.702, %v2607_v37  ;;  %v3212_v35 = vld [vmem:[%s4953_s10] sm:$0x3]  ;;  %p4080_p1 = scmp.lt.s32.totalorder %s3305_s19, %s3305_s19 }
0x1430   :  { %s4075_s10 = scalar_lea.vmem %s3305_s19, 32 }
0x1431   :  { %4065 = vpow2.f32 %v2614_v38  ;;  %v2616_v39 = vmul.f32 1.442695, %v3392_v52  ;;  %v3235_v52 = vrot.slane %v3212_v35, %v4226_v33  ;;  %p4076_p0 = scmp.ne.s32.totalorder %s3305_s19, %s4075_s10  ;;  %p4081_p2 = scmp.lt.s32.totalorder %s4075_s10, %s4075_s10 }
0x1433   :  { %4067 = vpow2.f32 %v2616_v39  ;;  %p4082_p3 = por %p4081_p2, %p4080_p1 }
0x1435   :  { %p4083_p4 = pnand %p4082_p3, %p4076_p0 }
0x143b   :  { %v4066_v26 = vpop.eup %4065 }
0x143c   :  { %v2618_v43 = vadd.f32 1.0, %v4066_v26 }
0x143d   :  { %v4068_v46 = vpop.eup %4067 }
0x143e   :  { %4069 = vrcp.f32 %v2618_v43  ;;  %v2619_v17 = vadd.f32 1.0, %v4068_v46 }
0x1440   :  { %4071 = vrcp.f32 %v2619_v17 }
0x1448   :  { %v4070_v47 = vpop.eup %4069 }
0x1449   :  { %v2624_v34 = vmul.f32 %v4070_v47, %v2604_v51 }
0x144a   :  { %v4072_v61 = vpop.eup %4071 }
0x144b   :  { %v2625_v23 = vmul.f32 %v4072_v61, %v2607_v37  ;;  %v3230_v37 = vrot.slane %v3212_v35, %v4216_v28 }
0x144d   :  { %v2626_v57 = vpack.c.bf16 %v2625_v23, %v2624_v34 }
0x144f   :  { %3822 = vmatmul.mubr.bf16.vlgmr.msra.gmra.mrb[84].mxu0 %v2626_v57 }
0x1522   :  { %v2726_v0 = vpop.f32.mrb[84].mxu0 }
0x1523   :  { %v2733_v12 = vadd.f32 %v2726_v0, %v4824_v41  ;;  %v3823_v1 = vpop.f32.mrb[85].mxu0  ;;  %v2824_v41 = vand.u32 4294901760, %v2823_v8 }
0x1524   :  { %v2729_v2 = vpop.f32.mrb[86].mxu0 }
0x1525   :  { %v2739_v13 = vadd.f32 %v2738_v60, %v2733_v12  ;;  %v2734_v3 = vadd.f32 %v2729_v2, %v4827_v15  ;;  %v3824_v62 = vpop.f32.mrb[87].mxu0 }
0x1527   :  { %v2754_v11 = vand.u32 4294901760, %v2739_v13  ;;  %v2740_v48 = vadd.f32 %v2738_v60, %v2734_v3 }
0x1529   :  { %v2832_v5 = vsub.f32 %v2739_v13, %v2754_v11  ;;  %v2757_v4 = vand.u32 4294901760, %v2740_v48 }
0x152b   :  { %v2833_v10 = vand.u32 4294901760, %v2832_v5  ;;  %v3876_v27 = vpack.c.bf16 %v2757_v4, %v2754_v11  ;;  %v2839_v54 = vsub.f32 %v2740_v48, %v2757_v4 }
0x152d   :  { %v2834_v16 = vsub.f32 %v2832_v5, %v2833_v10  ;;  %v2840_v45 = vand.u32 4294901760, %v2839_v54  ;;  %3877 = vmatpush3.bf16.msra.mxu1 %v3876_v27  ;;  %v3882_v21 = vpack.c.bf16 %v2839_v54, %v2832_v5 }
0x152e   :  { %3878 = vmatprep.subr.bf16.mxu1 %v4110_v40 }
0x152f   :  { %v2841_v22 = vsub.f32 %v2839_v54, %v2840_v45  ;;  %v3888_v24 = vpack.c.bf16 %v2840_v45, %v2833_v10  ;;  %v2835_v15 = vand.u32 4294901760, %v2834_v16 }
0x1530   :  { %3830 = vmatmul.mubr.f32.vlgmr.msra.gmra.mrb[72].mxu1 %v2824_v41 }
0x1531   :  { %v2842_v50 = vand.u32 4294901760, %v2841_v22  ;;  %3836 = vmatprep.mubr.msk.f32.mxu1 %vm4100_vm1, %v4099_v18 }
0x1533   :  { %v3879_v32 = vpack.c.bf16 %v2842_v50, %v2835_v15 }
0x1535   :  { %3880 = vmatpush3.bf16.msra.mxu1 %v3879_v32 }
0x1536   :  { %3881 = vmatprep.subr.bf16.mxu1 %v4110_v40 }
0x1538   :  { %3837 = vmatmul.mubr.msk.f32.vlgmr.msra.gmra.mrb[72].mxu1 %vm1073_vm5, %v3417_v56 }
0x1539   :  { %3883 = vmatpush3.bf16.msra.mxu1 %v3882_v21  ;;  %3843 = vmatprep.mubr.msk.f32.mxu1 %vm4100_vm1, %v4099_v18 }
0x153a   :  { %3884 = vmatprep.subr.bf16.mxu1 %v4110_v40 }
0x1540   :  { %3844 = vmatmul.mubr.f32.vlgmr.msra.gmra.mrb[72].mxu1 %v2821_v63 }
0x1541   :  { %3886 = vmatpush3.bf16.msra.mxu1 %v3876_v27  ;;  %3850 = vmatprep.mubr.msk.f32.mxu1 %vm4100_vm1, %v4099_v18 }
0x1542   :  { %3887 = vmatprep.subr.bf16.mxu1 %v4110_v40 }
0x1548   :  { %3851 = vmatmul.mubr.f32.vlgmr.msra.gmra.mrb[72].mxu1 %v2822_v42 }
0x1549   :  { %3889 = vmatpush3.bf16.msra.mxu1 %v3888_v24  ;;  %3857 = vmatprep.mubr.msk.f32.mxu1 %vm4100_vm1, %v4099_v18 }
0x154a   :  { %3890 = vmatprep.subr.bf16.mxu1 %v4110_v40 }
0x1550   :  { %3858 = vmatmul.mubr.msk.f32.vlgmr.msra.gmra.mrb[72].mxu1 %vm1073_vm5, %v3417_v56 }
0x1551   :  { %3892 = vmatpush3.bf16.msra.mxu1 %v3876_v27  ;;  %3864 = vmatprep.mubr.msk.f32.mxu1 %vm4100_vm1, %v4099_v18 }
0x1552   :  { %3867 = vmatprep.subr.bf16.mxu1 %v4099_v18 }
0x1558   :  { %3865 = vmatmul.mubr.msk.f32.vlgmr.msra.gmra.mrb[72].mxu1 %vm1073_vm5, %v3417_v56 }
0x1559   :  { %3871 = vmatprep.mubr.msk.bf16.mxu1 %vm4100_vm1, %v4099_v18  ;;  %3868 = vmatpush3.bf16.msra.mxu1 %v3975_v6 }
0x155a   :  { %3869 = vmatprep.subr.bf16.mxu1 %v4099_v18 }
0x155d   :  { %3870 = vmatpush3.bf16.msra.mxu1 %v3976_v49 }
0x162b   :  { %v3208_v25 = vpop.f32.mrb[72].mxu1 }
0x162c   :  { %v3866_v53 = vpop.f32.mrb[73].mxu1  ;;  %v3214_v58 = vsel %vm3213_vm8, %v3208_v25, 0.0 }
0x162d   :  { %3215 = vadd.xlane.f32.xlu1 %v3214_v58 }
0x16ba   :  { %v3216_v14 = vpop.xlane.xlu1 %3215 }
0x16bb   :  { %v3217_v7 = vmul.f32 0.03125, %v3216_v14 }
0x16bd   :  { %v3218_v29 = vsub.f32 %v3208_v25, %v3217_v7 }
0x16bf   :  { %v3219_v31 = vmul.f32 %v3218_v29, %v3218_v29 }
0x16c1   :  { %v3220_v20 = vsel %vm3213_vm8, %v3219_v31, 0.0 }
0x16c2   :  { %3221 = vadd.xlane.f32.xlu1 %v3220_v20 }
0x174f   :  { %v3222_v51 = vpop.xlane.xlu1 %3221 }
0x1750   :  { %v3223_v19 = vmul.f32 0.03125, %v3222_v51 }
0x1752   :  { %v3224_v9 = vadd.f32 1e-05, %v3223_v19 }
0x1754   :  { %4073 = vrsqrt.f32 %v3224_v9 }
0x175e   :  { %v4074_v36 = vpop.eup %4073 }
0x175f   :  { %v3226_v38 = vmul.f32 %v4074_v36, %v3218_v29 }
0x1761   :  { %v3231_v39 = vmul.f32 %v3230_v37, %v3226_v38 }
0x1763   :  { %v3236_v26 = vadd.f32 %v3235_v52, %v3231_v39 }
0x1765   :  { %v3237_v43 = vpack.c.bf16 %v3236_v26, %v3236_v26 }
0x1767   :  { %3872 = vmatmul.mubr.msk.bf16.vlgmr.msra.gmra.mrb[76].mxu1 %vm55_vm0, %v3237_v43 }
0x183a   :  { %v3291_v18 = vpop.f32.mrb[76].mxu1 }
0x183b   :  { %3297 = vst.msk [vmem:[#allocation2] sm:$0x3] %vm3213_vm8, %v3291_v18  ;;  %v3873_v46 = vpop.f32.mrb[77].mxu1 }
0x183c   :  { %v3294_v17 = vpop.f32.mrb[78].mxu1 }
0x183d   :  { %4086 = shalt.err (!%p4083_p4)
}
0x183e   :  { %s4087_s23 = scalar_lea.hbm %s4955_s12, 32 }
0x183f   :  { %p4088_p5 = scmp.ne.s32.totalorder %s4955_s12, %s4087_s23  ;;  %p4091_p6 = scmp.lt.u32.totalorder %s4087_s23, %s4955_s12 }
0x1841   :  { %p4093_p7 = pnand %p4091_p6, %p4088_p5 }
0x1843   :  { %4096 = shalt.err (!%p4093_p7)
}
0x1844   :  { %3307 = dma.vmem_to_hbm [thread:$0]  %s3305_s19, 32, %s4955_s12, [#allocation3]   ;;  %v3874_v28 = vpop.f32.mrb[79].mxu1 }
0x1845   :  { %4097 = dma.done.wait [#allocation3], 32  }
0x1846   :  { %4098 = vsyncadd [#allocation3], 4294967264 }
0x1847   :  { %3311 = vsyncpa [#allocation3], 1 }

</bundles_post_ra>
